<compile_context>
chip_gen: v5e
topology: v5e:2x2
jax: 0.10.0
libtpu: 0.0.40
codegen_flags: <defaults>
</compile_context>

<pallas_src>
import math
import functools

import jax
import jax.numpy as jnp
from jax import lax
from jax.experimental import pallas as pl
from jax.experimental.pallas import tpu as pltpu

LN_EPS = 1e-5          # torch.nn.LayerNorm default
NEG_INF = -1e30
VMEM_LIMIT = 64 * 1024 * 1024


def _pick_tile(dim, candidates):
    """Largest candidate tile that evenly divides `dim`, else the full dim."""
    for c in candidates:
        if c <= dim and dim % c == 0:
            return c
    return dim


def _layer_norm(x, gamma, beta):
    mu = jnp.mean(x, axis=-1, keepdims=True)
    var = jnp.mean((x - mu) ** 2, axis=-1, keepdims=True)
    return (x - mu) * lax.rsqrt(var + LN_EPS) * gamma + beta


# ----------------------------------------------------------------------------
# Fused transformer layers kernel.
# grid = (B, L): batch is "parallel", layer is "arbitrary" (sequential).
# The residual stream lives in an f32 VMEM scratch across the layer sweep.
# ----------------------------------------------------------------------------
def _layers_kernel(H, Hd, collect_attn,
                   x_ref,
                   wq_ref, bq_ref, wk_ref, bk_ref, wv_ref, bv_ref,
                   wo_ref, bo_ref, g1_ref, be1_ref,
                   w1_ref, b1_ref, w2_ref, b2_ref, g2_ref, be2_ref,
                   *out_refs_and_scratch):
    if collect_attn:
        out_ref, attn_ref, x_scr = out_refs_and_scratch
    else:
        out_ref, x_scr = out_refs_and_scratch
        attn_ref = None

    l = pl.program_id(1)

    @pl.when(l == 0)
    def _():
        x_scr[...] = x_ref[0].astype(jnp.float32)

    x = x_scr[...]                                          # (S, D) f32 residual
    S = x.shape[0]
    x_bf = x.astype(jnp.bfloat16)

    # QKV projections (bf16 MXU, f32 accumulation).
    q = jnp.dot(x_bf, wq_ref[0], preferred_element_type=jnp.float32) + bq_ref[0]
    k = jnp.dot(x_bf, wk_ref[0], preferred_element_type=jnp.float32) + bk_ref[0]
    v = jnp.dot(x_bf, wv_ref[0], preferred_element_type=jnp.float32) + bv_ref[0]
    q = q.astype(jnp.bfloat16)
    k = k.astype(jnp.bfloat16)
    v = v.astype(jnp.bfloat16)
    wo = wo_ref[0]                                          # (proj, D) bf16

    # Causal mask: True == masked future position (triu_(1) in PyTorch).
    row = lax.broadcasted_iota(jnp.int32, (S, S), 0)
    col = lax.broadcasted_iota(jnp.int32, (S, S), 1)
    causal = col > row

    scale = 1.0 / math.sqrt(Hd)
    attn_out = jnp.zeros_like(x)                            # (S, D) f32
    for h in range(H):                                      # H is small; unrolled
        qh = q[:, h * Hd:(h + 1) * Hd]
        kh = k[:, h * Hd:(h + 1) * Hd]
        vh = v[:, h * Hd:(h + 1) * Hd]
        s_h = jnp.dot(qh, kh.T, preferred_element_type=jnp.float32) * scale
        s_h = jnp.where(causal, NEG_INF, s_h)
        m = jnp.max(s_h, axis=-1, keepdims=True)
        p = jnp.exp(s_h - m)
        inv = pl.reciprocal(jnp.sum(p, axis=-1, keepdims=True), approx=True)
        attn_h = p * inv                                    # (S, S) f32
        if collect_attn:
            attn_ref[0, h] = attn_h.astype(attn_ref.dtype)
        ctx_h = jnp.dot(attn_h.astype(jnp.bfloat16), vh,
                        preferred_element_type=jnp.float32)  # (S, Hd)
        # Fold the output projection into the head loop (no concat, no live list).
        attn_out = attn_out + jnp.dot(ctx_h.astype(jnp.bfloat16),
                                      wo[h * Hd:(h + 1) * Hd, :],
                                      preferred_element_type=jnp.float32)
    attn_out = attn_out + bo_ref[0]

    # Residual + LayerNorm (SubLayer.layer_norm), f32 stats.
    h1 = _layer_norm(attn_out + x, g1_ref[0], be1_ref[0])

    # ResFF: Linear -> ReLU -> Linear, residual, LayerNorm (dropout = eval no-op).
    f = (jnp.dot(h1.astype(jnp.bfloat16), w1_ref[0],
                 preferred_element_type=jnp.float32) + b1_ref[0])
    f = jnp.maximum(f, 0.0)
    f = (jnp.dot(f.astype(jnp.bfloat16), w2_ref[0],
                 preferred_element_type=jnp.float32) + b2_ref[0])
    h2 = _layer_norm(f + h1, g2_ref[0], be2_ref[0])

    x_scr[...] = h2                                         # carry to next layer

    @pl.when(l == pl.num_programs(1) - 1)
    def _():
        out_ref[0] = h2.astype(out_ref.dtype)


def transformer_layers_forward(x, stacked, num_heads, head_size, collect_attn=True):
    """x: (B, S, D) f32; stacked: dict of (L, ...) weights. Returns (y, attns list)."""
    B, S, D = x.shape
    H, Hd = num_heads, head_size
    L = stacked["wq"].shape[0]

    names = ("wq", "bq", "wk", "bk", "wv", "bv", "wo", "bo", "ln1_g", "ln1_b",
             "w1", "b1", "w2", "b2", "ln2_g", "ln2_b")
    weights = tuple(stacked[n] for n in names)

    def wspec(a):
        nd = a.ndim
        return pl.BlockSpec((1,) + a.shape[1:],
                            lambda b, l, _n=nd: (l,) + (0,) * (_n - 1))

    in_specs = ([pl.BlockSpec((1, S, D), lambda b, l: (b, 0, 0))]
                + [wspec(w) for w in weights])

    out_specs = [pl.BlockSpec((1, S, D), lambda b, l: (b, 0, 0))]
    out_shapes = [jax.ShapeDtypeStruct((B, S, D), jnp.float32)]
    if collect_attn:
        out_specs.append(
            pl.BlockSpec((1, H, S, S), lambda b, l, _B=B: (l * _B + b, 0, 0, 0)))
        out_shapes.append(jax.ShapeDtypeStruct((L * B, H, S, S), jnp.float32))

    results = pl.pallas_call(
        functools.partial(_layers_kernel, H, Hd, collect_attn),
        grid=(B, L),
        in_specs=in_specs,
        out_specs=tuple(out_specs),
        out_shape=tuple(out_shapes),
        scratch_shapes=[pltpu.VMEM((S, D), jnp.float32)],
        compiler_params=pltpu.CompilerParams(
            dimension_semantics=("parallel", "arbitrary"),
            vmem_limit_bytes=VMEM_LIMIT),
    )(x, *weights)

    if collect_attn:
        y, attn_flat = results
        attns = [attn_flat[l * B:(l + 1) * B] for l in range(L)]
    else:
        (y,) = results
        attns = []
    return y, attns


# ----------------------------------------------------------------------------
# Generator: tiled Linear + log_softmax.
# Pass 1: logits per (row_tile, vocab_tile) + online logsumexp per row tile.
# Pass 2: subtract LSE per tile.
# ----------------------------------------------------------------------------
def _gen_logits_kernel(x_ref, w_ref, b_ref, logits_ref, lse_ref, m_scr, l_scr):
    j = pl.program_id(1)

    @pl.when(j == 0)
    def _():
        m_scr[...] = jnp.full_like(m_scr, -jnp.inf)
        l_scr[...] = jnp.zeros_like(l_scr)

    logits = (jnp.dot(x_ref[...], w_ref[...], preferred_element_type=jnp.float32)
              + b_ref[...])
    logits_ref[...] = logits

    m_prev = m_scr[...]
    m_new = jnp.maximum(m_prev, jnp.max(logits, axis=-1, keepdims=True))
    l_scr[...] = (l_scr[...] * jnp.exp(m_prev - m_new)
                  + jnp.sum(jnp.exp(logits - m_new), axis=-1, keepdims=True))
    m_scr[...] = m_new

    @pl.when(j == pl.num_programs(1) - 1)
    def _():
        lse_ref[...] = m_scr[...] + jnp.log(l_scr[...])


def _log_softmax_finalize_kernel(logits_ref, lse_ref, out_ref):
    out_ref[...] = logits_ref[...] - lse_ref[...]


def generator_forward(flat_bf16, gen_w, gen_b):
    """flat_bf16: (N, D) bf16; gen_w: (D, V) bf16; gen_b: (1, V) f32 -> (N, V) f32."""
    N, D = flat_bf16.shape
    V = gen_w.shape[1]
    tr = _pick_tile(N, (256, 128, 64, 32, 16, 8))
    tv = _pick_tile(V, (2048, 1024, 512, 256, 128))
    nr, nv = N // tr, V // tv

    logits, lse = pl.pallas_call(
        _gen_logits_kernel,
        grid=(nr, nv),
        in_specs=[pl.BlockSpec((tr, D), lambda i, j: (i, 0)),
                  pl.BlockSpec((D, tv), lambda i, j: (0, j)),
                  pl.BlockSpec((1, tv), lambda i, j: (0, j))],
        out_specs=(pl.BlockSpec((tr, tv), lambda i, j: (i, j)),
                   pl.BlockSpec((tr, 1), lambda i, j: (i, 0))),
        out_shape=(jax.ShapeDtypeStruct((N, V), jnp.float32),
                   jax.ShapeDtypeStruct((N, 1), jnp.float32)),
        scratch_shapes=[pltpu.VMEM((tr, 1), jnp.float32),
                        pltpu.VMEM((tr, 1), jnp.float32)],
        compiler_params=pltpu.CompilerParams(
            dimension_semantics=("parallel", "arbitrary"),
            vmem_limit_bytes=VMEM_LIMIT),
    )(flat_bf16, gen_w, gen_b)

    log_probs = pl.pallas_call(
        _log_softmax_finalize_kernel,
        grid=(nr, nv),
        in_specs=[pl.BlockSpec((tr, tv), lambda i, j: (i, j)),
                  pl.BlockSpec((tr, 1), lambda i, j: (i, 0))],
        out_specs=pl.BlockSpec((tr, tv), lambda i, j: (i, j)),
        out_shape=jax.ShapeDtypeStruct((N, V), jnp.float32),
        compiler_params=pltpu.CompilerParams(
            dimension_semantics=("parallel", "parallel"),
            vmem_limit_bytes=VMEM_LIMIT),
    )(logits, lse)
    return log_probs


# ----------------------------------------------------------------------------
# Full model wrapper (embedding gather + timing signal are cheap JAX glue)
# ----------------------------------------------------------------------------
def transformer_forward(tokens, params, num_heads, head_size,
                        max_timescale=1000.0, collect_attn=True):
    # tokens: (S, B) int32, exactly like the PyTorch module input (then .t()).
    tokens_bt = tokens.T                                    # (B, S)
    B, S = tokens_bt.shape
    emb = params["embedding"]                               # (V, D) f32, row 0 == 0
    D = emb.shape[1]

    x = emb[tokens_bt]                                      # (B, S, D) f32

    # add_timing_signal(x, 1000) -- interleaved sin/cos positional embedding
    nts = D // 2
    log_inc = math.log(max_timescale) / nts
    inv_inc = jnp.exp(-log_inc * jnp.arange(nts, dtype=jnp.float32))
    pos = jnp.arange(S, dtype=jnp.float32)[:, None]
    ang = pos * inv_inc[None, :]                            # (S, nts)
    pos_emb = jnp.zeros((S, D), jnp.float32)
    pos_emb = pos_emb.at[:, 0::2].set(jnp.sin(ang))
    pos_emb = pos_emb.at[:, 1::2].set(jnp.cos(ang))
    x = x + pos_emb[None]

    y, attns = transformer_layers_forward(x, params["layers"], num_heads,
                                          head_size, collect_attn=collect_attn)

    # last=False path: (B,S,D) -> (S,B,D) -> (S*B, D); cast to bf16 for the MXU.
    flat = jnp.transpose(y, (1, 0, 2)).reshape(S * B, D).astype(jnp.bfloat16)
    log_probs = generator_forward(flat, params["gen_w"], params["gen_b"])
    return log_probs, attns


# ----------------------------------------------------------------------------
# Deterministic parameter init (weights stacked over layers, bf16 matmul weights)
# ----------------------------------------------------------------------------
def init_params(key, vocab_size, input_size, num_heads, head_size,
                num_layers, inner_size):
    D, proj, L = input_size, num_heads * head_size, num_layers
    k_emb, k_gen, k_layers = jax.random.split(key, 3)
    ks = jax.random.split(k_layers, 6)

    emb = 0.05 * jax.random.normal(k_emb, (vocab_size, D), jnp.float32)
    emb = emb.at[0].set(0.0)                                # padding_idx=0

    def w(k, shape):
        return (0.05 * jax.random.normal(k, shape, jnp.float32)).astype(jnp.bfloat16)

    layers = dict(
        wq=w(ks[0], (L, D, proj)), bq=jnp.zeros((L, 1, proj), jnp.float32),
        wk=w(ks[1], (L, D, proj)), bk=jnp.zeros((L, 1, proj), jnp.float32),
        wv=w(ks[2], (L, D, proj)), bv=jnp.zeros((L, 1, proj), jnp.float32),
        wo=w(ks[3], (L, proj, D)), bo=jnp.zeros((L, 1, D), jnp.float32),
        ln1_g=jnp.ones((L, 1, D), jnp.float32),
        ln1_b=jnp.zeros((L, 1, D), jnp.float32),
        w1=w(ks[4], (L, D, inner_size)),
        b1=jnp.zeros((L, 1, inner_size), jnp.float32),
        w2=w(ks[5], (L, inner_size, D)),
        b2=jnp.zeros((L, 1, D), jnp.float32),
        ln2_g=jnp.ones((L, 1, D), jnp.float32),
        ln2_b=jnp.zeros((L, 1, D), jnp.float32),
    )

    gen_w = (0.05 * jax.random.normal(k_gen, (D, vocab_size), jnp.float32)
             ).astype(jnp.bfloat16)
    gen_b = jnp.zeros((1, vocab_size), jnp.float32)

    return dict(embedding=emb, layers=layers, gen_w=gen_w, gen_b=gen_b)


if __name__ == "__main__":
    # small shapes consistent with the module's forward
    seq_len, batch = 8, 2
    input_size, vocab_size = 32, 64
    num_heads, head_size = 4, 8
    num_layers, inner_size = 2, 64

    key = jax.random.PRNGKey(0)
    pkey, tkey = jax.random.split(key)
    params = init_params(pkey, vocab_size, input_size, num_heads, head_size,
                         num_layers, inner_size)
    tokens = jax.random.randint(tkey, (seq_len, batch), 1, vocab_size,
                                dtype=jnp.int32)

    fwd = jax.jit(functools.partial(transformer_forward,
                                    num_heads=num_heads, head_size=head_size))
    log_probs, attns = fwd(tokens, params)
    log_probs = jax.block_until_ready(log_probs)
    for a in attns:
        jax.block_until_ready(a)

    assert log_probs.shape == (seq_len * batch, vocab_size)
    assert len(attns) == num_layers
    assert all(a.shape == (batch, num_heads, seq_len, seq_len) for a in attns)
    # log_softmax rows must sum to ~1 in prob space
    assert bool(jnp.allclose(jnp.sum(jnp.exp(log_probs), axis=-1), 1.0, atol=1e-3))
    assert bool(jnp.all(jnp.isfinite(attns[0])))
    print("KERNEL_OK")
</pallas_src>

<mosaic_0001>
module attributes {stable_mosaic.version = 11 : i64} {
  func.func @_gen_logits_kernel(%arg0: i32, %arg1: i32, %arg2: memref<16x32xbf16, #tpu.memory_space<vmem>>, %arg3: memref<32x64xbf16, #tpu.memory_space<vmem>>, %arg4: memref<1x64xf32, #tpu.memory_space<vmem>>, %arg5: memref<16x64xf32, #tpu.memory_space<vmem>>, %arg6: memref<16x1xf32, #tpu.memory_space<vmem>>, %arg7: memref<16x1xf32, #tpu.memory_space<vmem>>, %arg8: memref<16x1xf32, #tpu.memory_space<vmem>>) attributes {dimension_semantics = [#tpu.dimension_semantics<parallel>, #tpu.dimension_semantics<arbitrary>], iteration_bounds = array<i64: 1, 1>, scalar_prefetch = 0 : i64, scratch_operands = 2 : i64, tpu.core_type = #tpu.core_type<tc>, window_params = [{transform_indices = @transform_0, window_bounds = array<i64: 16, 32>}, {transform_indices = @transform_1, window_bounds = array<i64: 32, 64>}, {transform_indices = @transform_2, window_bounds = array<i64: 1, 64>}, {transform_indices = @transform_3, window_bounds = array<i64: 16, 64>}, {transform_indices = @transform_4, window_bounds = array<i64: 16, 1>}]} {
    %c0_i32 = arith.constant 0 : i32
    %0 = arith.cmpi eq, %arg1, %c0_i32 : i32
    %1 = arith.extui %0 : i1 to i32
    %c0_i32_0 = arith.constant 0 : i32
    %2 = arith.cmpi ne, %1, %c0_i32_0 : i32
    scf.if %2 {
      %cst_20 = arith.constant 0xFF800000 : f32
      %29 = vector.broadcast %cst_20 : f32 to vector<16x1xf32>
      %c0_21 = arith.constant 0 : index
      %c0_22 = arith.constant 0 : index
      %30 = vector.load %arg7[%c0_21, %c0_22] : memref<16x1xf32, #tpu.memory_space<vmem>>, vector<16x1xf32>
      tpu.vector_store %arg7[%c0_21, %c0_22], %29 {strides = array<i32>} : memref<16x1xf32, #tpu.memory_space<vmem>>, vector<16x1xf32>,
      %cst_23 = arith.constant 0.000000e+00 : f32
      %31 = vector.broadcast %cst_23 : f32 to vector<16x1xf32>
      %c0_24 = arith.constant 0 : index
      %c0_25 = arith.constant 0 : index
      %32 = vector.load %arg8[%c0_24, %c0_25] : memref<16x1xf32, #tpu.memory_space<vmem>>, vector<16x1xf32>
      tpu.vector_store %arg8[%c0_24, %c0_25], %31 {strides = array<i32>} : memref<16x1xf32, #tpu.memory_space<vmem>>, vector<16x1xf32>,
    } else {
    }
    %c0 = arith.constant 0 : index
    %c0_1 = arith.constant 0 : index
    %3 = vector.load %arg2[%c0, %c0_1] : memref<16x32xbf16, #tpu.memory_space<vmem>>, vector<16x32xbf16>
    %c0_2 = arith.constant 0 : index
    %c0_3 = arith.constant 0 : index
    %4 = vector.load %arg3[%c0_2, %c0_3] : memref<32x64xbf16, #tpu.memory_space<vmem>>, vector<32x64xbf16>
    %cst = arith.constant dense<0.000000e+00> : vector<16x64xf32>
    %5 = tpu.matmul %3, %4, %cst {dimension_numbers = #tpu.dot_dimension_numbers<[1], [0], [0], [1], [0, 0, 1, 1], [], []>} : vector<16x32xbf16>, vector<32x64xbf16>, vector<16x64xf32> -> vector<16x64xf32>
    %c0_4 = arith.constant 0 : index
    %c0_5 = arith.constant 0 : index
    %6 = vector.load %arg4[%c0_4, %c0_5] : memref<1x64xf32, #tpu.memory_space<vmem>>, vector<1x64xf32>
    %7 = vector.broadcast %6 : vector<1x64xf32> to vector<16x64xf32>
    %8 = arith.addf %5, %7 : vector<16x64xf32>
    %c0_6 = arith.constant 0 : index
    %c0_7 = arith.constant 0 : index
    %9 = vector.load %arg5[%c0_6, %c0_7] : memref<16x64xf32, #tpu.memory_space<vmem>>, vector<16x64xf32>
    tpu.vector_store %arg5[%c0_6, %c0_7], %8 {strides = array<i32>} : memref<16x64xf32, #tpu.memory_space<vmem>>, vector<16x64xf32>,
    %c0_8 = arith.constant 0 : index
    %c0_9 = arith.constant 0 : index
    %10 = vector.load %arg7[%c0_8, %c0_9] : memref<16x1xf32, #tpu.memory_space<vmem>>, vector<16x1xf32>
    %cst_10 = arith.constant dense<0xFF800000> : vector<16xf32>
    %11 = vector.multi_reduction <maximumf>, %8, %cst_10 [1] : vector<16x64xf32> to vector<16xf32>
    %12 = vector.shape_cast %11 : vector<16xf32> to vector<16x1xf32>
    %13 = arith.maximumf %10, %12 : vector<16x1xf32>
    %c0_11 = arith.constant 0 : index
    %c0_12 = arith.constant 0 : index
    %14 = vector.load %arg8[%c0_11, %c0_12] : memref<16x1xf32, #tpu.memory_space<vmem>>, vector<16x1xf32>
    %15 = arith.subf %10, %13 : vector<16x1xf32>
    %16 = math.exp %15 : vector<16x1xf32>
    %17 = arith.mulf %14, %16 : vector<16x1xf32>
    %18 = vector.broadcast %13 : vector<16x1xf32> to vector<16x64xf32>
    %19 = arith.subf %8, %18 : vector<16x64xf32>
    %20 = math.exp %19 : vector<16x64xf32>
    %cst_13 = arith.constant dense<0.000000e+00> : vector<16xf32>
    %21 = vector.multi_reduction <add>, %20, %cst_13 [1] : vector<16x64xf32> to vector<16xf32>
    %22 = vector.shape_cast %21 : vector<16xf32> to vector<16x1xf32>
    %23 = arith.addf %17, %22 : vector<16x1xf32>
    %c0_14 = arith.constant 0 : index
    %c0_15 = arith.constant 0 : index
    %24 = vector.load %arg8[%c0_14, %c0_15] : memref<16x1xf32, #tpu.memory_space<vmem>>, vector<16x1xf32>
    tpu.vector_store %arg8[%c0_14, %c0_15], %23 {strides = array<i32>} : memref<16x1xf32, #tpu.memory_space<vmem>>, vector<16x1xf32>,
    %c0_16 = arith.constant 0 : index
    %c0_17 = arith.constant 0 : index
    %25 = vector.load %arg7[%c0_16, %c0_17] : memref<16x1xf32, #tpu.memory_space<vmem>>, vector<16x1xf32>
    tpu.vector_store %arg7[%c0_16, %c0_17], %13 {strides = array<i32>} : memref<16x1xf32, #tpu.memory_space<vmem>>, vector<16x1xf32>,
    %c0_i32_18 = arith.constant 0 : i32
    %26 = arith.cmpi eq, %arg1, %c0_i32_18 : i32
    %27 = arith.extui %26 : i1 to i32
    %c0_i32_19 = arith.constant 0 : i32
    %28 = arith.cmpi ne, %27, %c0_i32_19 : i32
    scf.if %28 {
      %c0_20 = arith.constant 0 : index
      %c0_21 = arith.constant 0 : index
      %29 = vector.load %arg7[%c0_20, %c0_21] : memref<16x1xf32, #tpu.memory_space<vmem>>, vector<16x1xf32>
      %c0_22 = arith.constant 0 : index
      %c0_23 = arith.constant 0 : index
      %30 = vector.load %arg8[%c0_22, %c0_23] : memref<16x1xf32, #tpu.memory_space<vmem>>, vector<16x1xf32>
      %31 = math.log %30 : vector<16x1xf32>
      %32 = arith.addf %29, %31 : vector<16x1xf32>
      %c0_24 = arith.constant 0 : index
      %c0_25 = arith.constant 0 : index
      %33 = vector.load %arg6[%c0_24, %c0_25] : memref<16x1xf32, #tpu.memory_space<vmem>>, vector<16x1xf32>
      tpu.vector_store %arg6[%c0_24, %c0_25], %32 {strides = array<i32>} : memref<16x1xf32, #tpu.memory_space<vmem>>, vector<16x1xf32>,
    } else {
    }
    return
  }
  func.func @transform_0(%arg0: i32, %arg1: i32) -> (i32, i32) {
    %c0_i32 = arith.constant 0 : i32
    %c0_i32_0 = arith.constant 0 : i32
    return %arg0, %c0_i32 : i32, i32
  }
  func.func @transform_1(%arg0: i32, %arg1: i32) -> (i32, i32) {
    %c0_i32 = arith.constant 0 : i32
    %c0_i32_0 = arith.constant 0 : i32
    return %c0_i32, %arg1 : i32, i32
  }
  func.func @transform_2(%arg0: i32, %arg1: i32) -> (i32, i32) {
    %c0_i32 = arith.constant 0 : i32
    %c0_i32_0 = arith.constant 0 : i32
    return %c0_i32, %arg1 : i32, i32
  }
  func.func @transform_3(%arg0: i32, %arg1: i32) -> (i32, i32) {
    %c0_i32 = arith.constant 0 : i32
    return %arg0, %arg1 : i32, i32
  }
  func.func @transform_4(%arg0: i32, %arg1: i32) -> (i32, i32) {
    %c0_i32 = arith.constant 0 : i32
    %c0_i32_0 = arith.constant 0 : i32
    return %arg0, %c0_i32 : i32, i32
  }
}

module attributes {stable_mosaic.version = 11 : i64} {
  func.func @_log_softmax_finalize_kernel(%arg0: i32, %arg1: i32, %arg2: memref<16x64xf32, #tpu.memory_space<vmem>>, %arg3: memref<16x1xf32, #tpu.memory_space<vmem>>, %arg4: memref<16x64xf32, #tpu.memory_space<vmem>>) attributes {dimension_semantics = [#tpu.dimension_semantics<parallel>, #tpu.dimension_semantics<parallel>], iteration_bounds = array<i64: 1, 1>, scalar_prefetch = 0 : i64, scratch_operands = 0 : i64, tpu.core_type = #tpu.core_type<tc>, window_params = [{transform_indices = @transform_0, window_bounds = array<i64: 16, 64>}, {transform_indices = @transform_1, window_bounds = array<i64: 16, 1>}, {transform_indices = @transform_2, window_bounds = array<i64: 16, 64>}]} {
    %c0 = arith.constant 0 : index
    %c0_0 = arith.constant 0 : index
    %0 = vector.load %arg2[%c0, %c0_0] : memref<16x64xf32, #tpu.memory_space<vmem>>, vector<16x64xf32>
    %c0_1 = arith.constant 0 : index
    %c0_2 = arith.constant 0 : index
    %1 = vector.load %arg3[%c0_1, %c0_2] : memref<16x1xf32, #tpu.memory_space<vmem>>, vector<16x1xf32>
    %2 = vector.broadcast %1 : vector<16x1xf32> to vector<16x64xf32>
    %3 = arith.subf %0, %2 : vector<16x64xf32>
    %c0_3 = arith.constant 0 : index
    %c0_4 = arith.constant 0 : index
    %4 = vector.load %arg4[%c0_3, %c0_4] : memref<16x64xf32, #tpu.memory_space<vmem>>, vector<16x64xf32>
    tpu.vector_store %arg4[%c0_3, %c0_4], %3 {strides = array<i32>} : memref<16x64xf32, #tpu.memory_space<vmem>>, vector<16x64xf32>,
    return
  }
  func.func @transform_0(%arg0: i32, %arg1: i32) -> (i32, i32) {
    %c0_i32 = arith.constant 0 : i32
    return %arg0, %arg1 : i32, i32
  }
  func.func @transform_1(%arg0: i32, %arg1: i32) -> (i32, i32) {
    %c0_i32 = arith.constant 0 : i32
    %c0_i32_0 = arith.constant 0 : i32
    return %arg0, %c0_i32 : i32, i32
  }
  func.func @transform_2(%arg0: i32, %arg1: i32) -> (i32, i32) {
    %c0_i32 = arith.constant 0 : i32
    return %arg0, %arg1 : i32, i32
  }
}

module attributes {stable_mosaic.version = 11 : i64} {
  func.func @_layers_kernel(%arg0: i32, %arg1: i32, %arg2: memref<1x8x32xf32, #tpu.memory_space<vmem>>, %arg3: memref<1x32x32xbf16, #tpu.memory_space<vmem>>, %arg4: memref<1x1x32xf32, #tpu.memory_space<vmem>>, %arg5: memref<1x32x32xbf16, #tpu.memory_space<vmem>>, %arg6: memref<1x1x32xf32, #tpu.memory_space<vmem>>, %arg7: memref<1x32x32xbf16, #tpu.memory_space<vmem>>, %arg8: memref<1x1x32xf32, #tpu.memory_space<vmem>>, %arg9: memref<1x32x32xbf16, #tpu.memory_space<vmem>>, %arg10: memref<1x1x32xf32, #tpu.memory_space<vmem>>, %arg11: memref<1x1x32xf32, #tpu.memory_space<vmem>>, %arg12: memref<1x1x32xf32, #tpu.memory_space<vmem>>, %arg13: memref<1x32x64xbf16, #tpu.memory_space<vmem>>, %arg14: memref<1x1x64xf32, #tpu.memory_space<vmem>>, %arg15: memref<1x64x32xbf16, #tpu.memory_space<vmem>>, %arg16: memref<1x1x32xf32, #tpu.memory_space<vmem>>, %arg17: memref<1x1x32xf32, #tpu.memory_space<vmem>>, %arg18: memref<1x1x32xf32, #tpu.memory_space<vmem>>, %arg19: memref<1x8x32xf32, #tpu.memory_space<vmem>>, %arg20: memref<1x4x8x8xf32, #tpu.memory_space<vmem>>, %arg21: memref<8x32xf32, #tpu.memory_space<vmem>>) attributes {dimension_semantics = [#tpu.dimension_semantics<parallel>, #tpu.dimension_semantics<arbitrary>], iteration_bounds = array<i64: 2, 2>, scalar_prefetch = 0 : i64, scratch_operands = 1 : i64, tpu.core_type = #tpu.core_type<tc>, window_params = [{transform_indices = @transform_0, window_bounds = array<i64: 1, 8, 32>}, {transform_indices = @transform_1, window_bounds = array<i64: 1, 32, 32>}, {transform_indices = @transform_2, window_bounds = array<i64: 1, 1, 32>}, {transform_indices = @transform_3, window_bounds = array<i64: 1, 32, 32>}, {transform_indices = @transform_4, window_bounds = array<i64: 1, 1, 32>}, {transform_indices = @transform_5, window_bounds = array<i64: 1, 32, 32>}, {transform_indices = @transform_6, window_bounds = array<i64: 1, 1, 32>}, {transform_indices = @transform_7, window_bounds = array<i64: 1, 32, 32>}, {transform_indices = @transform_8, window_bounds = array<i64: 1, 1, 32>}, {transform_indices = @transform_9, window_bounds = array<i64: 1, 1, 32>}, {transform_indices = @transform_10, window_bounds = array<i64: 1, 1, 32>}, {transform_indices = @transform_11, window_bounds = array<i64: 1, 32, 64>}, {transform_indices = @transform_12, window_bounds = array<i64: 1, 1, 64>}, {transform_indices = @transform_13, window_bounds = array<i64: 1, 64, 32>}, {transform_indices = @transform_14, window_bounds = array<i64: 1, 1, 32>}, {transform_indices = @transform_15, window_bounds = array<i64: 1, 1, 32>}, {transform_indices = @transform_16, window_bounds = array<i64: 1, 1, 32>}, {transform_indices = @transform_17, window_bounds = array<i64: 1, 8, 32>}, {transform_indices = @transform_18, window_bounds = array<i64: 1, 4, 8, 8>}]} {
    %c0_i32 = arith.constant 0 : i32
    %0 = arith.cmpi eq, %arg1, %c0_i32 : i32
    %1 = arith.extui %0 : i1 to i32
    %c0_i32_0 = arith.constant 0 : i32
    %2 = arith.cmpi ne, %1, %c0_i32_0 : i32
    scf.if %2 {
      %c0_110 = arith.constant 0 : index
      %c0_111 = arith.constant 0 : index
      %c0_112 = arith.constant 0 : index
      %227 = vector.load %arg2[%c0_110, %c0_111, %c0_112] : memref<1x8x32xf32, #tpu.memory_space<vmem>>, vector<1x8x32xf32>
      %228 = vector.shape_cast %227 : vector<1x8x32xf32> to vector<8x32xf32>
      %c0_113 = arith.constant 0 : index
      %c0_114 = arith.constant 0 : index
      %229 = vector.load %arg21[%c0_113, %c0_114] : memref<8x32xf32, #tpu.memory_space<vmem>>, vector<8x32xf32>
      tpu.vector_store %arg21[%c0_113, %c0_114], %228 {strides = array<i32>} : memref<8x32xf32, #tpu.memory_space<vmem>>, vector<8x32xf32>,
    } else {
    }
    %c0 = arith.constant 0 : index
    %c0_1 = arith.constant 0 : index
    %3 = vector.load %arg21[%c0, %c0_1] : memref<8x32xf32, #tpu.memory_space<vmem>>, vector<8x32xf32>
    %4 = arith.truncf %3 : vector<8x32xf32> to vector<8x32xbf16>
    %c0_2 = arith.constant 0 : index
    %c0_3 = arith.constant 0 : index
    %c0_4 = arith.constant 0 : index
    %5 = vector.load %arg3[%c0_2, %c0_3, %c0_4] : memref<1x32x32xbf16, #tpu.memory_space<vmem>>, vector<1x32x32xbf16>
    %6 = vector.shape_cast %5 : vector<1x32x32xbf16> to vector<32x32xbf16>
    %cst = arith.constant dense<0.000000e+00> : vector<8x32xf32>
    %7 = tpu.matmul %4, %6, %cst {dimension_numbers = #tpu.dot_dimension_numbers<[1], [0], [0], [1], [0, 0, 1, 1], [], []>} : vector<8x32xbf16>, vector<32x32xbf16>, vector<8x32xf32> -> vector<8x32xf32>
    %c0_5 = arith.constant 0 : index
    %c0_6 = arith.constant 0 : index
    %c0_7 = arith.constant 0 : index
    %8 = vector.load %arg4[%c0_5, %c0_6, %c0_7] : memref<1x1x32xf32, #tpu.memory_space<vmem>>, vector<1x1x32xf32>
    %9 = vector.shape_cast %8 : vector<1x1x32xf32> to vector<1x32xf32>
    %10 = vector.broadcast %9 : vector<1x32xf32> to vector<8x32xf32>
    %11 = arith.addf %7, %10 : vector<8x32xf32>
    %c0_8 = arith.constant 0 : index
    %c0_9 = arith.constant 0 : index
    %c0_10 = arith.constant 0 : index
    %12 = vector.load %arg5[%c0_8, %c0_9, %c0_10] : memref<1x32x32xbf16, #tpu.memory_space<vmem>>, vector<1x32x32xbf16>
    %13 = vector.shape_cast %12 : vector<1x32x32xbf16> to vector<32x32xbf16>
    %cst_11 = arith.constant dense<0.000000e+00> : vector<8x32xf32>
    %14 = tpu.matmul %4, %13, %cst_11 {dimension_numbers = #tpu.dot_dimension_numbers<[1], [0], [0], [1], [0, 0, 1, 1], [], []>} : vector<8x32xbf16>, vector<32x32xbf16>, vector<8x32xf32> -> vector<8x32xf32>
    %c0_12 = arith.constant 0 : index
    %c0_13 = arith.constant 0 : index
    %c0_14 = arith.constant 0 : index
    %15 = vector.load %arg6[%c0_12, %c0_13, %c0_14] : memref<1x1x32xf32, #tpu.memory_space<vmem>>, vector<1x1x32xf32>
    %16 = vector.shape_cast %15 : vector<1x1x32xf32> to vector<1x32xf32>
    %17 = vector.broadcast %16 : vector<1x32xf32> to vector<8x32xf32>
    %18 = arith.addf %14, %17 : vector<8x32xf32>
    %c0_15 = arith.constant 0 : index
    %c0_16 = arith.constant 0 : index
    %c0_17 = arith.constant 0 : index
    %19 = vector.load %arg7[%c0_15, %c0_16, %c0_17] : memref<1x32x32xbf16, #tpu.memory_space<vmem>>, vector<1x32x32xbf16>
    %20 = vector.shape_cast %19 : vector<1x32x32xbf16> to vector<32x32xbf16>
    %cst_18 = arith.constant dense<0.000000e+00> : vector<8x32xf32>
    %21 = tpu.matmul %4, %20, %cst_18 {dimension_numbers = #tpu.dot_dimension_numbers<[1], [0], [0], [1], [0, 0, 1, 1], [], []>} : vector<8x32xbf16>, vector<32x32xbf16>, vector<8x32xf32> -> vector<8x32xf32>
    %c0_19 = arith.constant 0 : index
    %c0_20 = arith.constant 0 : index
    %c0_21 = arith.constant 0 : index
    %22 = vector.load %arg8[%c0_19, %c0_20, %c0_21] : memref<1x1x32xf32, #tpu.memory_space<vmem>>, vector<1x1x32xf32>
    %23 = vector.shape_cast %22 : vector<1x1x32xf32> to vector<1x32xf32>
    %24 = vector.broadcast %23 : vector<1x32xf32> to vector<8x32xf32>
    %25 = arith.addf %21, %24 : vector<8x32xf32>
    %26 = arith.truncf %11 : vector<8x32xf32> to vector<8x32xbf16>
    %27 = arith.truncf %18 : vector<8x32xf32> to vector<8x32xbf16>
    %28 = arith.truncf %25 : vector<8x32xf32> to vector<8x32xbf16>
    %c0_22 = arith.constant 0 : index
    %c0_23 = arith.constant 0 : index
    %c0_24 = arith.constant 0 : index
    %29 = vector.load %arg9[%c0_22, %c0_23, %c0_24] : memref<1x32x32xbf16, #tpu.memory_space<vmem>>, vector<1x32x32xbf16>
    %30 = vector.shape_cast %29 : vector<1x32x32xbf16> to vector<32x32xbf16>
    %31 = tpu.iota {dimensions = array<i32: 0>} : vector<8x8xi32>
    %32 = tpu.iota {dimensions = array<i32: 1>} : vector<8x8xi32>
    %33 = arith.cmpi sgt, %32, %31 : vector<8x8xi32>
    %cst_25 = arith.constant 0.000000e+00 : f32
    %34 = vector.broadcast %cst_25 : f32 to vector<8x32xf32>
    %35 = vector.extract_strided_slice %26 {offsets = [0, 0], sizes = [8, 8], strides = [1, 1]} : vector<8x32xbf16> to vector<8x8xbf16>
    %36 = vector.extract_strided_slice %27 {offsets = [0, 0], sizes = [8, 8], strides = [1, 1]} : vector<8x32xbf16> to vector<8x8xbf16>
    %37 = vector.extract_strided_slice %28 {offsets = [0, 0], sizes = [8, 8], strides = [1, 1]} : vector<8x32xbf16> to vector<8x8xbf16>
    %38 = tpu.transpose %36, [1, 0] : vector<8x8xbf16> -> vector<8x8xbf16>
    %cst_26 = arith.constant dense<0.000000e+00> : vector<8x8xf32>
    %39 = tpu.matmul %35, %38, %cst_26 {dimension_numbers = #tpu.dot_dimension_numbers<[1], [0], [0], [1], [0, 0, 1, 1], [], []>} : vector<8x8xbf16>, vector<8x8xbf16>, vector<8x8xf32> -> vector<8x8xf32>
    %cst_27 = arith.constant 0.353553385 : f32
    %40 = vector.broadcast %cst_27 : f32 to vector<8x8xf32>
    %41 = arith.mulf %39, %40 : vector<8x8xf32>
    %cst_28 = arith.constant -1.000000e+30 : f32
    %42 = vector.broadcast %cst_28 : f32 to vector<8x8xf32>
    %43 = arith.select %33, %42, %41 : vector<8x8xi1>, vector<8x8xf32>
    %cst_29 = arith.constant dense<0xFF800000> : vector<8xf32>
    %44 = vector.multi_reduction <maximumf>, %43, %cst_29 [1] : vector<8x8xf32> to vector<8xf32>
    %45 = vector.shape_cast %44 : vector<8xf32> to vector<8x1xf32>
    %46 = vector.broadcast %45 : vector<8x1xf32> to vector<8x8xf32>
    %47 = arith.subf %43, %46 : vector<8x8xf32>
    %48 = math.exp %47 : vector<8x8xf32>
    %cst_30 = arith.constant dense<0.000000e+00> : vector<8xf32>
    %49 = vector.multi_reduction <add>, %48, %cst_30 [1] : vector<8x8xf32> to vector<8xf32>
    %50 = vector.shape_cast %49 : vector<8xf32> to vector<8x1xf32>
    %51 = tpu.reciprocal %50 {approx = true} : vector<8x1xf32> -> vector<8x1xf32>
    %52 = vector.broadcast %51 : vector<8x1xf32> to vector<8x8xf32>
    %53 = arith.mulf %48, %52 : vector<8x8xf32>
    %c0_31 = arith.constant 0 : index
    %c0_32 = arith.constant 0 : index
    %c0_33 = arith.constant 0 : index
    %c0_34 = arith.constant 0 : index
    %54 = vector.load %arg20[%c0_31, %c0_32, %c0_33, %c0_34] : memref<1x4x8x8xf32, #tpu.memory_space<vmem>>, vector<1x1x8x8xf32>
    %55 = vector.shape_cast %54 : vector<1x1x8x8xf32> to vector<8x8xf32>
    %56 = vector.shape_cast %53 : vector<8x8xf32> to vector<1x1x8x8xf32>
    tpu.vector_store %arg20[%c0_31, %c0_32, %c0_33, %c0_34], %56 {strides = array<i32>} : memref<1x4x8x8xf32, #tpu.memory_space<vmem>>, vector<1x1x8x8xf32>,
    %57 = arith.truncf %53 : vector<8x8xf32> to vector<8x8xbf16>
    %cst_35 = arith.constant dense<0.000000e+00> : vector<8x8xf32>
    %58 = tpu.matmul %57, %37, %cst_35 {dimension_numbers = #tpu.dot_dimension_numbers<[1], [0], [0], [1], [0, 0, 1, 1], [], []>} : vector<8x8xbf16>, vector<8x8xbf16>, vector<8x8xf32> -> vector<8x8xf32>
    %59 = arith.truncf %58 : vector<8x8xf32> to vector<8x8xbf16>
    %60 = vector.extract_strided_slice %30 {offsets = [0, 0], sizes = [8, 32], strides = [1, 1]} : vector<32x32xbf16> to vector<8x32xbf16>
    %cst_36 = arith.constant dense<0.000000e+00> : vector<8x32xf32>
    %61 = tpu.matmul %59, %60, %cst_36 {dimension_numbers = #tpu.dot_dimension_numbers<[1], [0], [0], [1], [0, 0, 1, 1], [], []>} : vector<8x8xbf16>, vector<8x32xbf16>, vector<8x32xf32> -> vector<8x32xf32>
    %62 = arith.addf %34, %61 : vector<8x32xf32>
    %63 = vector.extract_strided_slice %26 {offsets = [0, 8], sizes = [8, 8], strides = [1, 1]} : vector<8x32xbf16> to vector<8x8xbf16>
    %64 = vector.extract_strided_slice %27 {offsets = [0, 8], sizes = [8, 8], strides = [1, 1]} : vector<8x32xbf16> to vector<8x8xbf16>
    %65 = vector.extract_strided_slice %28 {offsets = [0, 8], sizes = [8, 8], strides = [1, 1]} : vector<8x32xbf16> to vector<8x8xbf16>
    %66 = tpu.transpose %64, [1, 0] : vector<8x8xbf16> -> vector<8x8xbf16>
    %cst_37 = arith.constant dense<0.000000e+00> : vector<8x8xf32>
    %67 = tpu.matmul %63, %66, %cst_37 {dimension_numbers = #tpu.dot_dimension_numbers<[1], [0], [0], [1], [0, 0, 1, 1], [], []>} : vector<8x8xbf16>, vector<8x8xbf16>, vector<8x8xf32> -> vector<8x8xf32>
    %cst_38 = arith.constant 0.353553385 : f32
    %68 = vector.broadcast %cst_38 : f32 to vector<8x8xf32>
    %69 = arith.mulf %67, %68 : vector<8x8xf32>
    %cst_39 = arith.constant -1.000000e+30 : f32
    %70 = vector.broadcast %cst_39 : f32 to vector<8x8xf32>
    %71 = arith.select %33, %70, %69 : vector<8x8xi1>, vector<8x8xf32>
    %cst_40 = arith.constant dense<0xFF800000> : vector<8xf32>
    %72 = vector.multi_reduction <maximumf>, %71, %cst_40 [1] : vector<8x8xf32> to vector<8xf32>
    %73 = vector.shape_cast %72 : vector<8xf32> to vector<8x1xf32>
    %74 = vector.broadcast %73 : vector<8x1xf32> to vector<8x8xf32>
    %75 = arith.subf %71, %74 : vector<8x8xf32>
    %76 = math.exp %75 : vector<8x8xf32>
    %cst_41 = arith.constant dense<0.000000e+00> : vector<8xf32>
    %77 = vector.multi_reduction <add>, %76, %cst_41 [1] : vector<8x8xf32> to vector<8xf32>
    %78 = vector.shape_cast %77 : vector<8xf32> to vector<8x1xf32>
    %79 = tpu.reciprocal %78 {approx = true} : vector<8x1xf32> -> vector<8x1xf32>
    %80 = vector.broadcast %79 : vector<8x1xf32> to vector<8x8xf32>
    %81 = arith.mulf %76, %80 : vector<8x8xf32>
    %c0_42 = arith.constant 0 : index
    %c1 = arith.constant 1 : index
    %c0_43 = arith.constant 0 : index
    %c0_44 = arith.constant 0 : index
    %82 = vector.load %arg20[%c0_42, %c1, %c0_43, %c0_44] : memref<1x4x8x8xf32, #tpu.memory_space<vmem>>, vector<1x1x8x8xf32>
    %83 = vector.shape_cast %82 : vector<1x1x8x8xf32> to vector<8x8xf32>
    %84 = vector.shape_cast %81 : vector<8x8xf32> to vector<1x1x8x8xf32>
    tpu.vector_store %arg20[%c0_42, %c1, %c0_43, %c0_44], %84 {strides = array<i32>} : memref<1x4x8x8xf32, #tpu.memory_space<vmem>>, vector<1x1x8x8xf32>,
    %85 = arith.truncf %81 : vector<8x8xf32> to vector<8x8xbf16>
    %cst_45 = arith.constant dense<0.000000e+00> : vector<8x8xf32>
    %86 = tpu.matmul %85, %65, %cst_45 {dimension_numbers = #tpu.dot_dimension_numbers<[1], [0], [0], [1], [0, 0, 1, 1], [], []>} : vector<8x8xbf16>, vector<8x8xbf16>, vector<8x8xf32> -> vector<8x8xf32>
    %87 = arith.truncf %86 : vector<8x8xf32> to vector<8x8xbf16>
    %88 = vector.extract_strided_slice %30 {offsets = [8, 0], sizes = [8, 32], strides = [1, 1]} : vector<32x32xbf16> to vector<8x32xbf16>
    %cst_46 = arith.constant dense<0.000000e+00> : vector<8x32xf32>
    %89 = tpu.matmul %87, %88, %cst_46 {dimension_numbers = #tpu.dot_dimension_numbers<[1], [0], [0], [1], [0, 0, 1, 1], [], []>} : vector<8x8xbf16>, vector<8x32xbf16>, vector<8x32xf32> -> vector<8x32xf32>
    %90 = arith.addf %62, %89 : vector<8x32xf32>
    %91 = vector.extract_strided_slice %26 {offsets = [0, 16], sizes = [8, 8], strides = [1, 1]} : vector<8x32xbf16> to vector<8x8xbf16>
    %92 = vector.extract_strided_slice %27 {offsets = [0, 16], sizes = [8, 8], strides = [1, 1]} : vector<8x32xbf16> to vector<8x8xbf16>
    %93 = vector.extract_strided_slice %28 {offsets = [0, 16], sizes = [8, 8], strides = [1, 1]} : vector<8x32xbf16> to vector<8x8xbf16>
    %94 = tpu.transpose %92, [1, 0] : vector<8x8xbf16> -> vector<8x8xbf16>
    %cst_47 = arith.constant dense<0.000000e+00> : vector<8x8xf32>
    %95 = tpu.matmul %91, %94, %cst_47 {dimension_numbers = #tpu.dot_dimension_numbers<[1], [0], [0], [1], [0, 0, 1, 1], [], []>} : vector<8x8xbf16>, vector<8x8xbf16>, vector<8x8xf32> -> vector<8x8xf32>
    %cst_48 = arith.constant 0.353553385 : f32
    %96 = vector.broadcast %cst_48 : f32 to vector<8x8xf32>
    %97 = arith.mulf %95, %96 : vector<8x8xf32>
    %cst_49 = arith.constant -1.000000e+30 : f32
    %98 = vector.broadcast %cst_49 : f32 to vector<8x8xf32>
    %99 = arith.select %33, %98, %97 : vector<8x8xi1>, vector<8x8xf32>
    %cst_50 = arith.constant dense<0xFF800000> : vector<8xf32>
    %100 = vector.multi_reduction <maximumf>, %99, %cst_50 [1] : vector<8x8xf32> to vector<8xf32>
    %101 = vector.shape_cast %100 : vector<8xf32> to vector<8x1xf32>
    %102 = vector.broadcast %101 : vector<8x1xf32> to vector<8x8xf32>
    %103 = arith.subf %99, %102 : vector<8x8xf32>
    %104 = math.exp %103 : vector<8x8xf32>
    %cst_51 = arith.constant dense<0.000000e+00> : vector<8xf32>
    %105 = vector.multi_reduction <add>, %104, %cst_51 [1] : vector<8x8xf32> to vector<8xf32>
    %106 = vector.shape_cast %105 : vector<8xf32> to vector<8x1xf32>
    %107 = tpu.reciprocal %106 {approx = true} : vector<8x1xf32> -> vector<8x1xf32>
    %108 = vector.broadcast %107 : vector<8x1xf32> to vector<8x8xf32>
    %109 = arith.mulf %104, %108 : vector<8x8xf32>
    %c0_52 = arith.constant 0 : index
    %c2 = arith.constant 2 : index
    %c0_53 = arith.constant 0 : index
    %c0_54 = arith.constant 0 : index
    %110 = vector.load %arg20[%c0_52, %c2, %c0_53, %c0_54] : memref<1x4x8x8xf32, #tpu.memory_space<vmem>>, vector<1x1x8x8xf32>
    %111 = vector.shape_cast %110 : vector<1x1x8x8xf32> to vector<8x8xf32>
    %112 = vector.shape_cast %109 : vector<8x8xf32> to vector<1x1x8x8xf32>
    tpu.vector_store %arg20[%c0_52, %c2, %c0_53, %c0_54], %112 {strides = array<i32>} : memref<1x4x8x8xf32, #tpu.memory_space<vmem>>, vector<1x1x8x8xf32>,
    %113 = arith.truncf %109 : vector<8x8xf32> to vector<8x8xbf16>
    %cst_55 = arith.constant dense<0.000000e+00> : vector<8x8xf32>
    %114 = tpu.matmul %113, %93, %cst_55 {dimension_numbers = #tpu.dot_dimension_numbers<[1], [0], [0], [1], [0, 0, 1, 1], [], []>} : vector<8x8xbf16>, vector<8x8xbf16>, vector<8x8xf32> -> vector<8x8xf32>
    %115 = arith.truncf %114 : vector<8x8xf32> to vector<8x8xbf16>
    %116 = vector.extract_strided_slice %30 {offsets = [16, 0], sizes = [8, 32], strides = [1, 1]} : vector<32x32xbf16> to vector<8x32xbf16>
    %cst_56 = arith.constant dense<0.000000e+00> : vector<8x32xf32>
    %117 = tpu.matmul %115, %116, %cst_56 {dimension_numbers = #tpu.dot_dimension_numbers<[1], [0], [0], [1], [0, 0, 1, 1], [], []>} : vector<8x8xbf16>, vector<8x32xbf16>, vector<8x32xf32> -> vector<8x32xf32>
    %118 = arith.addf %90, %117 : vector<8x32xf32>
    %119 = vector.extract_strided_slice %26 {offsets = [0, 24], sizes = [8, 8], strides = [1, 1]} : vector<8x32xbf16> to vector<8x8xbf16>
    %120 = vector.extract_strided_slice %27 {offsets = [0, 24], sizes = [8, 8], strides = [1, 1]} : vector<8x32xbf16> to vector<8x8xbf16>
    %121 = vector.extract_strided_slice %28 {offsets = [0, 24], sizes = [8, 8], strides = [1, 1]} : vector<8x32xbf16> to vector<8x8xbf16>
    %122 = tpu.transpose %120, [1, 0] : vector<8x8xbf16> -> vector<8x8xbf16>
    %cst_57 = arith.constant dense<0.000000e+00> : vector<8x8xf32>
    %123 = tpu.matmul %119, %122, %cst_57 {dimension_numbers = #tpu.dot_dimension_numbers<[1], [0], [0], [1], [0, 0, 1, 1], [], []>} : vector<8x8xbf16>, vector<8x8xbf16>, vector<8x8xf32> -> vector<8x8xf32>
    %cst_58 = arith.constant 0.353553385 : f32
    %124 = vector.broadcast %cst_58 : f32 to vector<8x8xf32>
    %125 = arith.mulf %123, %124 : vector<8x8xf32>
    %cst_59 = arith.constant -1.000000e+30 : f32
    %126 = vector.broadcast %cst_59 : f32 to vector<8x8xf32>
    %127 = arith.select %33, %126, %125 : vector<8x8xi1>, vector<8x8xf32>
    %cst_60 = arith.constant dense<0xFF800000> : vector<8xf32>
    %128 = vector.multi_reduction <maximumf>, %127, %cst_60 [1] : vector<8x8xf32> to vector<8xf32>
    %129 = vector.shape_cast %128 : vector<8xf32> to vector<8x1xf32>
    %130 = vector.broadcast %129 : vector<8x1xf32> to vector<8x8xf32>
    %131 = arith.subf %127, %130 : vector<8x8xf32>
    %132 = math.exp %131 : vector<8x8xf32>
    %cst_61 = arith.constant dense<0.000000e+00> : vector<8xf32>
    %133 = vector.multi_reduction <add>, %132, %cst_61 [1] : vector<8x8xf32> to vector<8xf32>
    %134 = vector.shape_cast %133 : vector<8xf32> to vector<8x1xf32>
    %135 = tpu.reciprocal %134 {approx = true} : vector<8x1xf32> -> vector<8x1xf32>
    %136 = vector.broadcast %135 : vector<8x1xf32> to vector<8x8xf32>
    %137 = arith.mulf %132, %136 : vector<8x8xf32>
    %c0_62 = arith.constant 0 : index
    %c3 = arith.constant 3 : index
    %c0_63 = arith.constant 0 : index
    %c0_64 = arith.constant 0 : index
    %138 = vector.load %arg20[%c0_62, %c3, %c0_63, %c0_64] : memref<1x4x8x8xf32, #tpu.memory_space<vmem>>, vector<1x1x8x8xf32>
    %139 = vector.shape_cast %138 : vector<1x1x8x8xf32> to vector<8x8xf32>
    %140 = vector.shape_cast %137 : vector<8x8xf32> to vector<1x1x8x8xf32>
    tpu.vector_store %arg20[%c0_62, %c3, %c0_63, %c0_64], %140 {strides = array<i32>} : memref<1x4x8x8xf32, #tpu.memory_space<vmem>>, vector<1x1x8x8xf32>,
    %141 = arith.truncf %137 : vector<8x8xf32> to vector<8x8xbf16>
    %cst_65 = arith.constant dense<0.000000e+00> : vector<8x8xf32>
    %142 = tpu.matmul %141, %121, %cst_65 {dimension_numbers = #tpu.dot_dimension_numbers<[1], [0], [0], [1], [0, 0, 1, 1], [], []>} : vector<8x8xbf16>, vector<8x8xbf16>, vector<8x8xf32> -> vector<8x8xf32>
    %143 = arith.truncf %142 : vector<8x8xf32> to vector<8x8xbf16>
    %144 = vector.extract_strided_slice %30 {offsets = [24, 0], sizes = [8, 32], strides = [1, 1]} : vector<32x32xbf16> to vector<8x32xbf16>
    %cst_66 = arith.constant dense<0.000000e+00> : vector<8x32xf32>
    %145 = tpu.matmul %143, %144, %cst_66 {dimension_numbers = #tpu.dot_dimension_numbers<[1], [0], [0], [1], [0, 0, 1, 1], [], []>} : vector<8x8xbf16>, vector<8x32xbf16>, vector<8x32xf32> -> vector<8x32xf32>
    %146 = arith.addf %118, %145 : vector<8x32xf32>
    %c0_67 = arith.constant 0 : index
    %c0_68 = arith.constant 0 : index
    %c0_69 = arith.constant 0 : index
    %147 = vector.load %arg10[%c0_67, %c0_68, %c0_69] : memref<1x1x32xf32, #tpu.memory_space<vmem>>, vector<1x1x32xf32>
    %148 = vector.shape_cast %147 : vector<1x1x32xf32> to vector<1x32xf32>
    %149 = vector.broadcast %148 : vector<1x32xf32> to vector<8x32xf32>
    %150 = arith.addf %146, %149 : vector<8x32xf32>
    %151 = arith.addf %150, %3 : vector<8x32xf32>
    %c0_70 = arith.constant 0 : index
    %c0_71 = arith.constant 0 : index
    %c0_72 = arith.constant 0 : index
    %152 = vector.load %arg11[%c0_70, %c0_71, %c0_72] : memref<1x1x32xf32, #tpu.memory_space<vmem>>, vector<1x1x32xf32>
    %153 = vector.shape_cast %152 : vector<1x1x32xf32> to vector<1x32xf32>
    %c0_73 = arith.constant 0 : index
    %c0_74 = arith.constant 0 : index
    %c0_75 = arith.constant 0 : index
    %154 = vector.load %arg12[%c0_73, %c0_74, %c0_75] : memref<1x1x32xf32, #tpu.memory_space<vmem>>, vector<1x1x32xf32>
    %155 = vector.shape_cast %154 : vector<1x1x32xf32> to vector<1x32xf32>
    %cst_76 = arith.constant dense<0.000000e+00> : vector<8xf32>
    %156 = vector.multi_reduction <add>, %151, %cst_76 [1] : vector<8x32xf32> to vector<8xf32>
    %157 = vector.shape_cast %156 : vector<8xf32> to vector<8x1xf32>
    %cst_77 = arith.constant 3.200000e+01 : f32
    %158 = vector.broadcast %cst_77 : f32 to vector<8x1xf32>
    %159 = arith.divf %157, %158 : vector<8x1xf32>
    %160 = vector.broadcast %159 : vector<8x1xf32> to vector<8x32xf32>
    %161 = arith.subf %151, %160 : vector<8x32xf32>
    %162 = arith.mulf %161, %161 : vector<8x32xf32>
    %cst_78 = arith.constant dense<0.000000e+00> : vector<8xf32>
    %163 = vector.multi_reduction <add>, %162, %cst_78 [1] : vector<8x32xf32> to vector<8xf32>
    %164 = vector.shape_cast %163 : vector<8xf32> to vector<8x1xf32>
    %cst_79 = arith.constant 3.200000e+01 : f32
    %165 = vector.broadcast %cst_79 : f32 to vector<8x1xf32>
    %166 = arith.divf %164, %165 : vector<8x1xf32>
    %167 = vector.broadcast %159 : vector<8x1xf32> to vector<8x32xf32>
    %168 = arith.subf %151, %167 : vector<8x32xf32>
    %cst_80 = arith.constant 9.99999974E-6 : f32
    %169 = vector.broadcast %cst_80 : f32 to vector<8x1xf32>
    %170 = arith.addf %166, %169 : vector<8x1xf32>
    %171 = math.rsqrt %170 : vector<8x1xf32>
    %172 = vector.broadcast %171 : vector<8x1xf32> to vector<8x32xf32>
    %173 = arith.mulf %168, %172 : vector<8x32xf32>
    %174 = vector.broadcast %153 : vector<1x32xf32> to vector<8x32xf32>
    %175 = arith.mulf %173, %174 : vector<8x32xf32>
    %176 = vector.broadcast %155 : vector<1x32xf32> to vector<8x32xf32>
    %177 = arith.addf %175, %176 : vector<8x32xf32>
    %178 = arith.truncf %177 : vector<8x32xf32> to vector<8x32xbf16>
    %c0_81 = arith.constant 0 : index
    %c0_82 = arith.constant 0 : index
    %c0_83 = arith.constant 0 : index
    %179 = vector.load %arg13[%c0_81, %c0_82, %c0_83] : memref<1x32x64xbf16, #tpu.memory_space<vmem>>, vector<1x32x64xbf16>
    %180 = vector.shape_cast %179 : vector<1x32x64xbf16> to vector<32x64xbf16>
    %cst_84 = arith.constant dense<0.000000e+00> : vector<8x64xf32>
    %181 = tpu.matmul %178, %180, %cst_84 {dimension_numbers = #tpu.dot_dimension_numbers<[1], [0], [0], [1], [0, 0, 1, 1], [], []>} : vector<8x32xbf16>, vector<32x64xbf16>, vector<8x64xf32> -> vector<8x64xf32>
    %c0_85 = arith.constant 0 : index
    %c0_86 = arith.constant 0 : index
    %c0_87 = arith.constant 0 : index
    %182 = vector.load %arg14[%c0_85, %c0_86, %c0_87] : memref<1x1x64xf32, #tpu.memory_space<vmem>>, vector<1x1x64xf32>
    %183 = vector.shape_cast %182 : vector<1x1x64xf32> to vector<1x64xf32>
    %184 = vector.broadcast %183 : vector<1x64xf32> to vector<8x64xf32>
    %185 = arith.addf %181, %184 : vector<8x64xf32>
    %cst_88 = arith.constant 0.000000e+00 : f32
    %186 = vector.broadcast %cst_88 : f32 to vector<8x64xf32>
    %187 = arith.maximumf %185, %186 : vector<8x64xf32>
    %188 = arith.truncf %187 : vector<8x64xf32> to vector<8x64xbf16>
    %c0_89 = arith.constant 0 : index
    %c0_90 = arith.constant 0 : index
    %c0_91 = arith.constant 0 : index
    %189 = vector.load %arg15[%c0_89, %c0_90, %c0_91] : memref<1x64x32xbf16, #tpu.memory_space<vmem>>, vector<1x64x32xbf16>
    %190 = vector.shape_cast %189 : vector<1x64x32xbf16> to vector<64x32xbf16>
    %cst_92 = arith.constant dense<0.000000e+00> : vector<8x32xf32>
    %191 = tpu.matmul %188, %190, %cst_92 {dimension_numbers = #tpu.dot_dimension_numbers<[1], [0], [0], [1], [0, 0, 1, 1], [], []>} : vector<8x64xbf16>, vector<64x32xbf16>, vector<8x32xf32> -> vector<8x32xf32>
    %c0_93 = arith.constant 0 : index
    %c0_94 = arith.constant 0 : index
    %c0_95 = arith.constant 0 : index
    %192 = vector.load %arg16[%c0_93, %c0_94, %c0_95] : memref<1x1x32xf32, #tpu.memory_space<vmem>>, vector<1x1x32xf32>
    %193 = vector.shape_cast %192 : vector<1x1x32xf32> to vector<1x32xf32>
    %194 = vector.broadcast %193 : vector<1x32xf32> to vector<8x32xf32>
    %195 = arith.addf %191, %194 : vector<8x32xf32>
    %196 = arith.addf %195, %177 : vector<8x32xf32>
    %c0_96 = arith.constant 0 : index
    %c0_97 = arith.constant 0 : index
    %c0_98 = arith.constant 0 : index
    %197 = vector.load %arg17[%c0_96, %c0_97, %c0_98] : memref<1x1x32xf32, #tpu.memory_space<vmem>>, vector<1x1x32xf32>
    %198 = vector.shape_cast %197 : vector<1x1x32xf32> to vector<1x32xf32>
    %c0_99 = arith.constant 0 : index
    %c0_100 = arith.constant 0 : index
    %c0_101 = arith.constant 0 : index
    %199 = vector.load %arg18[%c0_99, %c0_100, %c0_101] : memref<1x1x32xf32, #tpu.memory_space<vmem>>, vector<1x1x32xf32>
    %200 = vector.shape_cast %199 : vector<1x1x32xf32> to vector<1x32xf32>
    %cst_102 = arith.constant dense<0.000000e+00> : vector<8xf32>
    %201 = vector.multi_reduction <add>, %196, %cst_102 [1] : vector<8x32xf32> to vector<8xf32>
    %202 = vector.shape_cast %201 : vector<8xf32> to vector<8x1xf32>
    %cst_103 = arith.constant 3.200000e+01 : f32
    %203 = vector.broadcast %cst_103 : f32 to vector<8x1xf32>
    %204 = arith.divf %202, %203 : vector<8x1xf32>
    %205 = vector.broadcast %204 : vector<8x1xf32> to vector<8x32xf32>
    %206 = arith.subf %196, %205 : vector<8x32xf32>
    %207 = arith.mulf %206, %206 : vector<8x32xf32>
    %cst_104 = arith.constant dense<0.000000e+00> : vector<8xf32>
    %208 = vector.multi_reduction <add>, %207, %cst_104 [1] : vector<8x32xf32> to vector<8xf32>
    %209 = vector.shape_cast %208 : vector<8xf32> to vector<8x1xf32>
    %cst_105 = arith.constant 3.200000e+01 : f32
    %210 = vector.broadcast %cst_105 : f32 to vector<8x1xf32>
    %211 = arith.divf %209, %210 : vector<8x1xf32>
    %212 = vector.broadcast %204 : vector<8x1xf32> to vector<8x32xf32>
    %213 = arith.subf %196, %212 : vector<8x32xf32>
    %cst_106 = arith.constant 9.99999974E-6 : f32
    %214 = vector.broadcast %cst_106 : f32 to vector<8x1xf32>
    %215 = arith.addf %211, %214 : vector<8x1xf32>
    %216 = math.rsqrt %215 : vector<8x1xf32>
    %217 = vector.broadcast %216 : vector<8x1xf32> to vector<8x32xf32>
    %218 = arith.mulf %213, %217 : vector<8x32xf32>
    %219 = vector.broadcast %198 : vector<1x32xf32> to vector<8x32xf32>
    %220 = arith.mulf %218, %219 : vector<8x32xf32>
    %221 = vector.broadcast %200 : vector<1x32xf32> to vector<8x32xf32>
    %222 = arith.addf %220, %221 : vector<8x32xf32>
    %c0_107 = arith.constant 0 : index
    %c0_108 = arith.constant 0 : index
    %223 = vector.load %arg21[%c0_107, %c0_108] : memref<8x32xf32, #tpu.memory_space<vmem>>, vector<8x32xf32>
    tpu.vector_store %arg21[%c0_107, %c0_108], %222 {strides = array<i32>} : memref<8x32xf32, #tpu.memory_space<vmem>>, vector<8x32xf32>,
    %c1_i32 = arith.constant 1 : i32
    %224 = arith.cmpi eq, %arg1, %c1_i32 : i32
    %225 = arith.extui %224 : i1 to i32
    %c0_i32_109 = arith.constant 0 : i32
    %226 = arith.cmpi ne, %225, %c0_i32_109 : i32
    scf.if %226 {
      %c0_110 = arith.constant 0 : index
      %c0_111 = arith.constant 0 : index
      %c0_112 = arith.constant 0 : index
      %227 = vector.load %arg19[%c0_110, %c0_111, %c0_112] : memref<1x8x32xf32, #tpu.memory_space<vmem>>, vector<1x8x32xf32>
      %228 = vector.shape_cast %227 : vector<1x8x32xf32> to vector<8x32xf32>
      %229 = vector.shape_cast %222 : vector<8x32xf32> to vector<1x8x32xf32>
      tpu.vector_store %arg19[%c0_110, %c0_111, %c0_112], %229 {strides = array<i32>} : memref<1x8x32xf32, #tpu.memory_space<vmem>>, vector<1x8x32xf32>,
    } else {
    }
    return
  }
  func.func @transform_0(%arg0: i32, %arg1: i32) -> (i32, i32, i32) {
    %c0_i32 = arith.constant 0 : i32
    %c0_i32_0 = arith.constant 0 : i32
    %c0_i32_1 = arith.constant 0 : i32
    return %arg0, %c0_i32, %c0_i32_0 : i32, i32, i32
  }
  func.func @transform_1(%arg0: i32, %arg1: i32) -> (i32, i32, i32) {
    %c0_i32 = arith.constant 0 : i32
    %c0_i32_0 = arith.constant 0 : i32
    %c0_i32_1 = arith.constant 0 : i32
    return %arg1, %c0_i32, %c0_i32_0 : i32, i32, i32
  }
  func.func @transform_2(%arg0: i32, %arg1: i32) -> (i32, i32, i32) {
    %c0_i32 = arith.constant 0 : i32
    %c0_i32_0 = arith.constant 0 : i32
    %c0_i32_1 = arith.constant 0 : i32
    return %arg1, %c0_i32, %c0_i32_0 : i32, i32, i32
  }
  func.func @transform_3(%arg0: i32, %arg1: i32) -> (i32, i32, i32) {
    %c0_i32 = arith.constant 0 : i32
    %c0_i32_0 = arith.constant 0 : i32
    %c0_i32_1 = arith.constant 0 : i32
    return %arg1, %c0_i32, %c0_i32_0 : i32, i32, i32
  }
  func.func @transform_4(%arg0: i32, %arg1: i32) -> (i32, i32, i32) {
    %c0_i32 = arith.constant 0 : i32
    %c0_i32_0 = arith.constant 0 : i32
    %c0_i32_1 = arith.constant 0 : i32
    return %arg1, %c0_i32, %c0_i32_0 : i32, i32, i32
  }
  func.func @transform_5(%arg0: i32, %arg1: i32) -> (i32, i32, i32) {
    %c0_i32 = arith.constant 0 : i32
    %c0_i32_0 = arith.constant 0 : i32
    %c0_i32_1 = arith.constant 0 : i32
    return %arg1, %c0_i32, %c0_i32_0 : i32, i32, i32
  }
  func.func @transform_6(%arg0: i32, %arg1: i32) -> (i32, i32, i32) {
    %c0_i32 = arith.constant 0 : i32
    %c0_i32_0 = arith.constant 0 : i32
    %c0_i32_1 = arith.constant 0 : i32
    return %arg1, %c0_i32, %c0_i32_0 : i32, i32, i32
  }
  func.func @transform_7(%arg0: i32, %arg1: i32) -> (i32, i32, i32) {
    %c0_i32 = arith.constant 0 : i32
    %c0_i32_0 = arith.constant 0 : i32
    %c0_i32_1 = arith.constant 0 : i32
    return %arg1, %c0_i32, %c0_i32_0 : i32, i32, i32
  }
  func.func @transform_8(%arg0: i32, %arg1: i32) -> (i32, i32, i32) {
    %c0_i32 = arith.constant 0 : i32
    %c0_i32_0 = arith.constant 0 : i32
    %c0_i32_1 = arith.constant 0 : i32
    return %arg1, %c0_i32, %c0_i32_0 : i32, i32, i32
  }
  func.func @transform_9(%arg0: i32, %arg1: i32) -> (i32, i32, i32) {
    %c0_i32 = arith.constant 0 : i32
    %c0_i32_0 = arith.constant 0 : i32
    %c0_i32_1 = arith.constant 0 : i32
    return %arg1, %c0_i32, %c0_i32_0 : i32, i32, i32
  }
  func.func @transform_10(%arg0: i32, %arg1: i32) -> (i32, i32, i32) {
    %c0_i32 = arith.constant 0 : i32
    %c0_i32_0 = arith.constant 0 : i32
    %c0_i32_1 = arith.constant 0 : i32
    return %arg1, %c0_i32, %c0_i32_0 : i32, i32, i32
  }
  func.func @transform_11(%arg0: i32, %arg1: i32) -> (i32, i32, i32) {
    %c0_i32 = arith.constant 0 : i32
    %c0_i32_0 = arith.constant 0 : i32
    %c0_i32_1 = arith.constant 0 : i32
    return %arg1, %c0_i32, %c0_i32_0 : i32, i32, i32
  }
  func.func @transform_12(%arg0: i32, %arg1: i32) -> (i32, i32, i32) {
    %c0_i32 = arith.constant 0 : i32
    %c0_i32_0 = arith.constant 0 : i32
    %c0_i32_1 = arith.constant 0 : i32
    return %arg1, %c0_i32, %c0_i32_0 : i32, i32, i32
  }
  func.func @transform_13(%arg0: i32, %arg1: i32) -> (i32, i32, i32) {
    %c0_i32 = arith.constant 0 : i32
    %c0_i32_0 = arith.constant 0 : i32
    %c0_i32_1 = arith.constant 0 : i32
    return %arg1, %c0_i32, %c0_i32_0 : i32, i32, i32
  }
  func.func @transform_14(%arg0: i32, %arg1: i32) -> (i32, i32, i32) {
    %c0_i32 = arith.constant 0 : i32
    %c0_i32_0 = arith.constant 0 : i32
    %c0_i32_1 = arith.constant 0 : i32
    return %arg1, %c0_i32, %c0_i32_0 : i32, i32, i32
  }
  func.func @transform_15(%arg0: i32, %arg1: i32) -> (i32, i32, i32) {
    %c0_i32 = arith.constant 0 : i32
    %c0_i32_0 = arith.constant 0 : i32
    %c0_i32_1 = arith.constant 0 : i32
    return %arg1, %c0_i32, %c0_i32_0 : i32, i32, i32
  }
  func.func @transform_16(%arg0: i32, %arg1: i32) -> (i32, i32, i32) {
    %c0_i32 = arith.constant 0 : i32
    %c0_i32_0 = arith.constant 0 : i32
    %c0_i32_1 = arith.constant 0 : i32
    return %arg1, %c0_i32, %c0_i32_0 : i32, i32, i32
  }
  func.func @transform_17(%arg0: i32, %arg1: i32) -> (i32, i32, i32) {
    %c0_i32 = arith.constant 0 : i32
    %c0_i32_0 = arith.constant 0 : i32
    %c0_i32_1 = arith.constant 0 : i32
    return %arg0, %c0_i32, %c0_i32_0 : i32, i32, i32
  }
  func.func @transform_18(%arg0: i32, %arg1: i32) -> (i32, i32, i32, i32) {
    %c2_i32 = arith.constant 2 : i32
    %0 = arith.muli %arg1, %c2_i32 : i32
    %1 = arith.addi %0, %arg0 : i32
    %c0_i32 = arith.constant 0 : i32
    %c0_i32_0 = arith.constant 0 : i32
    %c0_i32_1 = arith.constant 0 : i32
    %c0_i32_2 = arith.constant 0 : i32
    return %1, %c0_i32, %c0_i32_0, %c0_i32_1 : i32, i32, i32, i32
  }
}

</mosaic_0001>

<bundles_post_ra>
// kernel: transformer_forward.4
= control target key start
LH: loop header
LB: loop body
LE: loop exit
PB: predicated region body
PF: predicated region fallthrough
CT: control target
= control target key end

     0   :  { %vm53_vm0 = vcmask 261120   ;;  %vm21_vm1 = vcmask 7168   ;;  %v180_v3 = vmov -inf   ;;  %vm71_vm2 = vcmask 523264   ;;  %s248_s1 = inlined_call_operand.vmem [shape: bf16[32,64], index: 1, kind: input, shape index: {}]   ;;  %s249_s2 = inlined_call_operand.vmem [shape: f32[1,64], index: 2, kind: input, shape index: {}]   ;;  %s250_s0 = inlined_call_operand.vmem [shape: bf16[16,32], index: 0, kind: input, shape index: {}]   ;;  %s251_s3 = inlined_call_operand.vmem [shape: f32[16,64], index: 3, kind: output, shape index: {0}]   ;;  %s252_s4 = inlined_call_operand.vmem [shape: f32[16,1], index: 4, kind: output, shape index: {1}]  }
   0x1   :  { %v161_v0 = vld [vmem:[%s248_s1 + $0x8] sm:$0xff]  ;;  %v160_v1 = vld [vmem:[%s248_s1] sm:$0xff]  ;;  %22 = vst.msk [vmem:[#allocation2] sm:$0xff] %vm21_vm1, %v180_v3  ;;  %v181_v11 = vmov 0   ;;  %v182_v12 = vmov 0.0  }
   0x2   :  { %63 = vmatpush.bf16.msra.mxu0 %v161_v0  ;;  %v159_v2 = vld [vmem:[%s250_s0] sm:$0xff]  ;;  %23 = vst.msk [vmem:[#allocation2 + $0x8] sm:$0xff] %vm21_vm1, %v180_v3  ;;  %165 = vset.pattern.permute.xlu1 %v181_v11 }
   0x3   :  { %v167_v4 = vld [vmem:[%s249_s2] ss:$0 sm:$0xff]  ;;  %166 = vset.pattern.permute.xlu0 %v181_v11  ;;  %24 = vst.msk [vmem:[#allocation3] sm:$0xff] %vm21_vm1, %v182_v12 }
   0x4   :  { %25 = vst.msk [vmem:[#allocation3 + $0x8] sm:$0xff] %vm21_vm1, %v182_v12 }
   0x6   :  { %64 = vmatpush.bf16.msra.mxu0 %v160_v1 }
   0x8   :  { %v74_v13 = vld [vmem:[#allocation2] sm:$0xff] }
   0x9   :  { %158 = vmatmul.msk.bf16.vlgmr.msra.gmra.mxu0 %vm53_vm0, %v159_v2  ;;  %v75_v17 = vld [vmem:[#allocation2 + $0x8] sm:$0xff] }
   0xa   :  { %v84_v34 = vld [vmem:[#allocation3] sm:$0xff] }
   0xb   :  { %v85_v39 = vld [vmem:[#allocation3 + $0x8] sm:$0xff] }
  0x86   :  { %v66_v5 = vpop.f32.mrf.mxu0 }
  0x87   :  { %v67_v6 = vadd.f32 %v167_v4, %v66_v5 }
  0x89   :  { %72 = vst.msk [vmem:[%s251_s3] sm:$0xff] %vm71_vm2, %v67_v6  ;;  %v76_v7 = vsel %vm71_vm2, %v67_v6, -inf }
  0x8a   :  { %77 = vmax.xlane.f32.xlu0 %v76_v7 }
  0x8e   :  { %v68_v8 = vpop.f32.mrf.mxu0 }
  0x8f   :  { %v69_v9 = vadd.f32 %v167_v4, %v68_v8 }
  0x91   :  { %73 = vst.msk [vmem:[%s251_s3 + $0x8] sm:$0xff] %vm71_vm2, %v69_v9  ;;  %v79_v10 = vsel %vm71_vm2, %v69_v9, -inf }
  0x92   :  { %80 = vmax.xlane.f32.xlu0 %v79_v10 }
  0xfd   :  { %v78_v14 = vpop.xlane.xlu0 %77 }
  0xfe   :  { %v82_v15 = vmax.f32 %v74_v13, %v78_v14 }
 0x100   :  { %v86_v16 = vsub.f32 %v74_v13, %v82_v15  ;;  %121 = vst.msk [vmem:[#allocation2] sm:$0xff] %vm21_vm1, %v82_v15  ;;  %96 = vperm.xlu1 %165, %v82_v15  }
 0x102   :  { %v88_v31 = vmul.f32 1.442695, %v86_v16 }
 0x105   :  { %v81_v18 = vpop.xlane.xlu0 %80 }
 0x106   :  { %v83_v19 = vmax.f32 %v75_v17, %v81_v18 }
 0x107   :  { %v126_v47 = vld [vmem:[#allocation2] sm:$0xff] }
 0x108   :  { %v87_v20 = vsub.f32 %v75_v17, %v83_v19  ;;  %122 = vst.msk [vmem:[#allocation2 + $0x8] sm:$0xff] %vm21_vm1, %v83_v19  ;;  %101 = vperm.xlu1 %165, %v83_v19  }
 0x10a   :  { %v90_v32 = vmul.f32 1.442695, %v87_v20 }
 0x10f   :  { %v127_v51 = vld [vmem:[#allocation2 + $0x8] sm:$0xff] }
 0x172   :  { %v97_v21 = vpop.permute.xlu1 %96 }
 0x173   :  { %v104_v22 = vsub.f32 %v67_v6, %v97_v21 }
 0x175   :  { %v106_v23 = vmul.f32 1.442695, %v104_v22 }
 0x177   :  { %168 = vpow2.f32 %v106_v23 }
 0x17a   :  { %v102_v24 = vpop.permute.xlu1 %101 }
 0x17b   :  { %v105_v25 = vsub.f32 %v69_v9, %v102_v24 }
 0x17d   :  { %v169_v26 = vpop.eup %168  ;;  %v108_v27 = vmul.f32 1.442695, %v105_v25 }
 0x17e   :  { %v110_v28 = vsel %vm71_vm2, %v169_v26, 0.0 }
 0x17f   :  { %170 = vpow2.f32 %v108_v27  ;;  %111 = vadd.xlane.f32.xlu2 %v110_v28 }
 0x180   :  { %172 = vpow2.f32 %v88_v31 }
 0x181   :  { %174 = vpow2.f32 %v90_v32 }
 0x185   :  { %v171_v29 = vpop.eup %170 }
 0x186   :  { %v113_v30 = vsel %vm71_vm2, %v171_v29, 0.0  ;;  %v173_v33 = vpop.eup %172 }
 0x187   :  { %114 = vadd.xlane.f32.xlu2 %v113_v30  ;;  %v92_v35 = vmul.f32 %v173_v33, %v84_v34  ;;  %v175_v38 = vpop.eup %174 }
 0x188   :  { %v93_v40 = vmul.f32 %v175_v38, %v85_v39 }
 0x1f2   :  { %v112_v36 = vpop.xlane.xlu2 %111 }
 0x1f3   :  { %v116_v37 = vadd.f32 %v112_v36, %v92_v35 }
 0x1f5   :  { %119 = vst.msk [vmem:[#allocation3] sm:$0xff] %vm21_vm1, %v116_v37 }
 0x1fa   :  { %v115_v41 = vpop.xlane.xlu2 %114 }
 0x1fb   :  { %v117_v42 = vadd.f32 %v115_v41, %v93_v40 }
 0x1fc   :  { %v128_v43 = vld [vmem:[#allocation3] sm:$0xff] }
 0x1fd   :  { %176 = vlog2.f32 %v128_v43  ;;  %120 = vst.msk [vmem:[#allocation3 + $0x8] sm:$0xff] %vm21_vm1, %v117_v42 }
 0x203   :  { %v177_v44 = vpop.eup %176 }
 0x204   :  { %v131_v45 = vmul.f32 0.6931472, %v177_v44  ;;  %v129_v46 = vld [vmem:[#allocation3 + $0x8] sm:$0xff] }
 0x205   :  { %178 = vlog2.f32 %v129_v46 }
 0x206   :  { %v134_v48 = vadd.f32 %v131_v45, %v126_v47 }
 0x208   :  { %136 = vst.msk [vmem:[%s252_s4] sm:$0xff] %vm21_vm1, %v134_v48 }
 0x20b   :  { %v179_v49 = vpop.eup %178 }
 0x20c   :  { %v133_v50 = vmul.f32 0.6931472, %v179_v49 }
 0x20e   :  { %v135_v52 = vadd.f32 %v133_v50, %v127_v51 }
 0x210   :  { %137 = vst.msk [vmem:[%s252_s4 + $0x8] sm:$0xff] %vm21_vm1, %v135_v52 }

// kernel: transformer_forward.5
= control target key start
LH: loop header
LB: loop body
LE: loop exit
PB: predicated region body
PF: predicated region fallthrough
CT: control target
= control target key end

     0   :  { %s114_s0 = inlined_call_operand.vmem [shape: f32[16,64], index: 0, kind: input, shape index: {}]   ;;  %s115_s1 = inlined_call_operand.vmem [shape: f32[16,1], index: 1, kind: input, shape index: {}]   ;;  %s116_s2 = inlined_call_operand.hbm [shape: f32[16,64], index: 2, kind: output, shape index: {}]  }
   0x1   :  { %v14_v0 = vld [vmem:[%s115_s1] sm:$0xff] }
   0x2   :  { %7 = vsyncpa [#allocation3], 0  ;;  %v80_v1 = vmov 0   ;;  %v15_v2 = vld [vmem:[%s115_s1 + $0x8] sm:$0xff]  ;;  %v12_v3 = vld [vmem:[%s114_s0] sm:$0xff]  ;;  %vm28_vm0 = vcmask 523264  }
   0x3   :  { %53 = vset.pattern.permute.xlu0 %v80_v1  ;;  %s81_s15 = smov [#allocation2]   ;;  %s37_s19 = sshll.u32 %s116_s2, 4  ;;  %v13_v6 = vld [vmem:[%s114_s0 + $0x8] sm:$0xff]  ;;  %s38_s19 = int_to_ptr.hbm [resolvable:$true] %s37_s19 }
   0x4   :  { %18 = vperm.xlu0 %53, %v14_v0   ;;  %s35_s16 = sshll.u32 %s81_s15, 4  ;;  %s82_s1 = smov 128   ;;  %s36_s16 = int_to_ptr.vmem [resolvable:$true] %s35_s16 }
   0x5   :  { %s83_s22 = smov 8  }
   0xc   :  { %23 = vperm.xlu0 %53, %v15_v2  }
  0x76   :  { %v19_v4 = vpop.permute.xlu0 %18 }
  0x77   :  { %v26_v5 = vsub.f32 %v12_v3, %v19_v4 }
  0x79   :  { %29 = vst.msk [vmem:[#allocation2] sm:$0xff] %vm28_vm0, %v26_v5 }
  0x7e   :  { %v24_v7 = vpop.permute.xlu0 %23 }
  0x7f   :  { %v27_v8 = vsub.f32 %v13_v6, %v24_v7 }
  0x81   :  { %30 = vst.msk [vmem:[#allocation2 + $0x8] sm:$0xff] %vm28_vm0, %v27_v8 }
  0x82   :  { %43 = dma.vmem_to_hbm [thread:$0]  %s36_s16, 256, %s38_s19, [#allocation3], %s82_s1, %s82_s1, %s83_s22  }
  0x83   :  { %78 = dma.done.wait [#allocation3], 256  }
  0x84   :  { %79 = vsyncadd [#allocation3], 4294967040 }
  0x85   :  { %48 = vsyncpa [#allocation3], 1 }

// kernel: transformer_forward.3
= control target key start
LH: loop header
LB: loop body
LE: loop exit
PB: predicated region body
PF: predicated region fallthrough
CT: control target
= control target key end

     0   :  { %s2089_s27 = smov 0   ;;  %s2091_s28 = smov 0   ;;  %s2378_s0 = inlined_call_operand.vmem [shape: f32[2,8,32], index: 0, kind: input, shape index: {}]   ;;  %s2379_s1 = inlined_call_operand.vmem [shape: bf16[2,32,32], index: 1, kind: input, shape index: {}]   ;;  %s2380_s2 = inlined_call_operand.vmem [shape: f32[2,1,32], index: 2, kind: input, shape index: {}]   ;;  %s2381_s3 = inlined_call_operand.vmem [shape: bf16[2,32,32], index: 3, kind: input, shape index: {}]   ;;  %s2382_s4 = inlined_call_operand.vmem [shape: f32[2,1,32], index: 4, kind: input, shape index: {}]   ;;  %s2383_s5 = inlined_call_operand.vmem [shape: bf16[2,32,32], index: 5, kind: input, shape index: {}]   ;;  %s2384_s6 = inlined_call_operand.vmem [shape: f32[2,1,32], index: 6, kind: input, shape index: {}]   ;;  %s2385_s7 = inlined_call_operand.vmem [shape: bf16[2,32,32], index: 7, kind: input, shape index: {}]   ;;  %s2386_s8 = inlined_call_operand.vmem [shape: f32[2,1,32], index: 8, kind: input, shape index: {}]   ;;  %s2387_s9 = inlined_call_operand.vmem [shape: f32[2,1,32], index: 9, kind: input, shape index: {}]   ;;  %s2388_s10 = inlined_call_operand.vmem [shape: f32[2,1,32], index: 10, kind: input, shape index: {}]   ;;  %s2389_s11 = inlined_call_operand.vmem [shape: bf16[2,32,64], index: 11, kind: input, shape index: {}]   ;;  %s2390_s12 = inlined_call_operand.vmem [shape: f32[2,1,64], index: 12, kind: input, shape index: {}]   ;;  %s2391_s13 = inlined_call_operand.vmem [shape: bf16[2,64,32], index: 13, kind: input, shape index: {}]   ;;  %s2392_s14 = inlined_call_operand.vmem [shape: f32[2,1,32], index: 14, kind: input, shape index: {}]   ;;  %s2393_s15 = inlined_call_operand.vmem [shape: f32[2,1,32], index: 15, kind: input, shape index: {}]   ;;  %s2394_s16 = inlined_call_operand.vmem [shape: f32[2,1,32], index: 16, kind: input, shape index: {}]   ;;  %s2395_s17 = inlined_call_operand.vmem [shape: f32[2,8,32], index: 17, kind: output, shape index: {0}]   ;;  %s2396_s18 = inlined_call_operand.vmem [shape: f32[4,4,8,8], index: 18, kind: output, shape index: {1}]  }
   0x1   :  { %2402 = sst [smem:[#allocation10_spill]] %s2378_s0  ;;  %s2093_s29 = smov 0  }
   0x2   :  { %2403 = sst [smem:[#allocation11_spill]] %s2379_s1  ;;  %s2095_s30 = smov 0  }
   0x3   :  { %2404 = sst [smem:[#allocation12_spill]] %s2380_s2  ;;  %s2097_s0 = smov 0  }
   0x4   :  { %2405 = sst [smem:[#allocation13_spill]] %s2381_s3 }
   0x5   :  { %2406 = sst [smem:[#allocation14_spill]] %s2383_s5 }
   0x6   :  { %2407 = sst [smem:[#allocation15_spill]] %s2385_s7 }
   0x7   :  { %2408 = sst [smem:[#allocation16_spill]] %s2386_s8 }
   0x8   :  { %2409 = sst [smem:[#allocation17_spill]] %s2387_s9 }
   0x9   :  { %2410 = sst [smem:[#allocation18_spill]] %s2388_s10 }
   0xa   :  { %2411 = sst [smem:[#allocation19_spill]] %s2389_s11 }
   0xb   :  { %2412 = sst [smem:[#allocation20_spill]] %s2390_s12 }
   0xc   :  { %2413 = sst [smem:[#allocation21_spill]] %s2391_s13 }
   0xd   :  { %2414 = sst [smem:[#allocation22_spill]] %s2392_s14 }
   0xe   :  { %2415 = sst [smem:[#allocation23_spill]] %s2393_s15 }
   0xf   :  { %2416 = sst [smem:[#allocation24_spill]] %s2394_s16 }
  0x10   :  { %2417 = sst [smem:[#allocation25_spill]] %s2395_s17 }
  0x11   :  { %2418 = sst [smem:[#allocation26_spill]] %s2396_s18 }
  0x12 LB: > { %2419 = sst [smem:[#allocation3_spill]] %s1972_s27  ;;  %s38_s19 = sadd.s32 1, %s1980_s29  ;;  %s1988_s0 = sphi %s2097_s0, %s29_s0   ;;  %s1984_s30 = sphi %s2095_s30, %s2465_s30   ;;  %s1980_s29 = sphi %s2093_s29, %s2464_s29   ;;  %s1976_s28 = sphi %s2091_s28, %s2463_s28   ;;  %s1972_s27 = sphi %s2089_s27, %s2462_s27  }
  0x13   : > { %2420 = sst [smem:[#allocation4_spill]] %s1980_s29  ;;  %s41_s1 = sadd.s32 1, %s1984_s30 }
  0x14   : > { %2421 = sst [smem:[#allocation5_spill]] %s1984_s30  ;;  %p39_p0 = scmp.ge.s32.totalorder %s38_s19, 2 }
  0x15   : > { %2422 = sst [smem:[#allocation6_spill]] %s1988_s0  ;;  %p1765_p1 = scmp.ge.s32.totalorder %s1988_s0, 1 }
  0x16   : > { %p670_p2 = scmp.lt.s32.totalorder %s1988_s0, 5  ;;  %s2467_s19 = smov (%p39_p0, %s38_s19), 0 }
  0x17   : > { %2423 = sst [smem:[#allocation7_spill]] %s2467_s19  ;;  %s2469_s1 = smov (!%p39_p0, %s41_s1), %s1984_s30 }
  0x18   : > { %p671_p3 = pnand %p1765_p1, %p670_p2  ;;  %p43_p4 = scmp.ge.s32.totalorder %s2469_s1, 2 }
  0x1a   : > { %s2471_s1 = smov (%p43_p4, %s2469_s1), 0  ;;  %674 = sbr.rel (%p671_p3) target bundleno = 2219 (0x8ab), region = 88 }
  0x1b   : > { %2424 = sst [smem:[#allocation8_spill]] %s2471_s1 }
  0x1f   : > { %p789_p5 = scmp.lt.s32.totalorder %s1976_s28, 1  ;;  %p793_p6 = scmp.lt.s32.totalorder %s1972_s27, 1 }
  0x20   : > { %s1780_s20 = sshll.u32 %s1972_s27, 1  ;;  %s2425_s26 = sld [smem:[#allocation10_spill]] }
  0x21   : > { %s790_s21 = scalar_select %p789_p5, %s1976_s28, 1 }
  0x22   : > { %s2124_s22 = scalar_select %p793_p6, %s1972_s27, 1 }
  0x23   : > { %s1766_s2 = sshll.u32 %s790_s21, 3  ;;  %s858_s23 = sadd.s32 %s1976_s28, %s1780_s20 }
  0x24   : > { %s1855_s19 = sshll.u32 %s2124_s22, 4  ;;  %s2426_s0 = sld [smem:[#allocation11_spill]] }
  0x25   : > { %s2429_s3 = sld [smem:[#allocation13_spill]]  ;;  %p859_p7 = scmp.lt.s32.totalorder %s858_s23, 3 }
  0x26   : > { %s792_s1 = scalar_lea.vmem %s2425_s26, %s1766_s2  ;;  %s2430_s5 = sld [smem:[#allocation14_spill]] }
  0x27   : > { %s2431_s7 = sld [smem:[#allocation15_spill]]  ;;  %s2473_s23 = smov (!%p859_p7, %s858_s23), 3 }
  0x28   : > { %s2435_s11 = sld [smem:[#allocation19_spill]] }
  0x29   : > { %s2437_s15 = sld [smem:[#allocation22_spill]] }
  0x2a   : > { %s2133_s27 = scalar_lea.vmem %s2426_s0, %s1855_s19  ;;  %s2438_s25 = sld [smem:[#allocation21_spill]] }
  0x2b   : > { %2427 = sst [smem:[#allocation9_spill]] %s2133_s27  ;;  %s805_s28 = scalar_lea.vmem %s2429_s3, %s1855_s19 }
  0x2c   : > { %s2149_s29 = scalar_lea.vmem %s2430_s5, %s1855_s19  ;;  %s2439_s3 = sld [smem:[#allocation23_spill]] }
  0x2d   : > { %s2158_s16 = scalar_lea.vmem %s2431_s7, %s1855_s19  ;;  %s1860_s7 = sshll.u32 %s2124_s22, 5 }
  0x2e   : > { %s2175_s0 = scalar_lea.vmem %s2435_s11, %s1855_s19  ;;  %s2440_s11 = sld [smem:[#allocation24_spill]] }
  0x2f   : > { %s846_s8 = scalar_lea.vmem %s2437_s15, %s2124_s22  ;;  %s2441_s27 = sld [smem:[#allocation25_spill]] }
  0x30   : > { %s2189_s9 = scalar_lea.vmem %s2438_s25, %s1860_s7  ;;  %s1861_s15 = sshll.u32 %s2473_s23, 5 }
  0x31   : > { %s2442_s7 = sld [smem:[#allocation26_spill]] }
  0x32   : > { %s849_s5 = scalar_lea.vmem %s2439_s3, %s2124_s22  ;;  %s2443_s20 = sld [smem:[#allocation3_spill]] }
  0x34   : > { %s852_s10 = scalar_lea.vmem %s2440_s11, %s2124_s22 }
  0x35   : > { %s2202_s12 = scalar_lea.vmem %s2441_s27, %s1766_s2 }
  0x37   : > { %s2207_s25 = scalar_lea.vmem %s2442_s7, %s1861_s15 }
  0x38   : > { %p1783_p8 = scmp.ne.s32.totalorder %s2443_s20, 0 }
  0x3a   : > { %870 = sbr.rel (%p1783_p8) target bundleno = 65 (0x41), region = 92 }
  0x3f   : > { %v871_v0 = vld [vmem:[%s792_s1] sm:$0xff]  ;;  %vm872_vm0 = vcmask 261120  }
  0x40   : > { %873 = vst.msk [vmem:[#allocation2] sm:$0xff] %vm872_vm0, %v871_v0 }
  0x41 PF: > { %s2444_s3 = sld [smem:[#allocation9_spill]]  ;;  %v1865_v2 = vld [vmem:[%s805_s28 + $0x8] sm:$0xff]  ;;  %v1864_v4 = vld [vmem:[%s805_s28] sm:$0xff]  ;;  %vm896_vm1 = vcmask 261120   ;;  %s2447_s24 = scalar_lea.vmem %s2382_s4, %s2124_s22  ;;  %vm991_vm2 = vcmask 64512   ;;  %v986_v29 = vlaneseq  ;;  %vm1029_vm4 = vcmask 1043456  }
  0x42   : > { %939 = vmatpush.bf16.msra.mxu1 %v1865_v2  ;;  %s2445_s1 = sld [smem:[#allocation12_spill]]  ;;  %v1919_v8 = vld [vmem:[%s2447_s24] ss:$0 sm:$0xff]  ;;  %s1990_s14 = smov 112   ;;  %v1867_v22 = vld [vmem:[%s2149_s29 + $0x8] sm:$0xff]  ;;  %vm1437_vm9 = vcmask 523264  }
  0x43   : > { %s1991_s26 = smov 120   ;;  %s1992_s19 = smov 104   ;;  %972 = vmatpush.bf16.msra.mxu2 %v1867_v22  ;;  %v1866_v24 = vld [vmem:[%s2149_s29] sm:$0xff]  ;;  %v2241_v30 = vshrl.u32 %v986_v29, 7  ;;  %v2243_v31 = vand.u32 127, %v986_v29 }
  0x44   : > { %s2448_s17 = scalar_lea.vmem %s2384_s6, %s2124_s22  ;;  %v982_v61 = vld [vmem:[%s2158_s16] sm:$0xf]  ;;  %s2449_s13 = sld [smem:[#allocation16_spill]] }
  0x45   : > { %vm990_vm3 = vcmp.gt.s32.totalorder %v2243_v31, %v2241_v30  ;;  %v1920_v54 = vld [vmem:[%s2448_s17] ss:$0 sm:$0xff]  ;;  %v1140_v62 = vsel %vm1029_vm4, %v982_v61, 0  ;;  %s2451_s7 = sld [smem:[#allocation17_spill]] }
  0x46   : > { %940 = vmatpush.bf16.msra.mxu1 %v1864_v4  ;;  %s2453_s11 = sld [smem:[#allocation18_spill]] }
  0x47   : > { %v1863_v1 = vld [vmem:[%s2444_s3 + $0x8] sm:$0xff]  ;;  %v1862_v3 = vld [vmem:[%s2444_s3] sm:$0xff]  ;;  %973 = vmatpush.bf16.msra.mxu2 %v1866_v24  ;;  %s2455_s23 = sld [smem:[#allocation20_spill]] }
  0x48   : > { %906 = vmatpush.bf16.msra.mxu0 %v1863_v1  ;;  %v2212_v5 = vld [vmem:[#allocation2] sm:$0xff]  ;;  %s2446_s2 = scalar_lea.vmem %s2445_s1, %s2124_s22  ;;  %s2460_s18 = sld [smem:[#allocation3_spill]] }
  0x49   : > { %v875_v6 = vpack.c.bf16 %v2212_v5, %v2212_v5  ;;  %v1918_v7 = vld [vmem:[%s2446_s2] ss:$0 sm:$0xff] }
  0x4a   : > { %s2450_s21 = scalar_lea.vmem %s2449_s13, %s2124_s22 }
  0x4b   : > { %1801 = vmatmul.msk.bf16.vlgmr.msra.gmra.mxu1 %vm896_vm1, %v875_v6  ;;  %1810 = vmatmul.msk.bf16.vlgmr.msra.gmra.mxu2 %vm896_vm1, %v875_v6 }
  0x4c   : > { %907 = vmatpush.bf16.msra.mxu0 %v1862_v3  ;;  %s2454_s27 = scalar_lea.vmem %s2453_s11, %s2124_s22 }
  0x4d   : > { %s2456_s28 = scalar_lea.vmem %s2455_s23, %s2124_s22 }
  0x4e   : > { %p1852_p9 = scmp.ne.s32.totalorder %s2460_s18, 1 }
  0x4f   : > { %1792 = vmatmul.msk.bf16.vlgmr.msra.gmra.mxu0 %vm896_vm1, %v875_v6 }
  0xc8   : > { %v942_v10 = vpop.f32.mrf.mxu1 }
  0xc9   : > { %v943_v12 = vadd.f32 %v1919_v8, %v942_v10 }
  0xcb   : > { %v980_v13 = vpack.c.bf16 %v943_v12, %v943_v12 }
  0xcc   : > { %v909_v9 = vpop.f32.mrf.mxu0 }
  0xcd   : > { %v910_v11 = vadd.f32 %v1918_v7, %v909_v9  ;;  %v1053_v15 = vunpack.c.l.b16 %v980_v13  ;;  %v996_v16 = vsel %vm991_vm2, %v980_v13, 0 }
  0xce   : > { %1005 = vmatpush.bf16.xpose.msra.mxu3 %v996_v16  ;;  %v975_v53 = vpop.f32.mrf.mxu2 }
  0xcf   : > { %v979_v14 = vpack.c.bf16 %v910_v11, %v910_v11  ;;  %v1054_v17 = vpack.c.b16 %v1053_v15, %v1053_v15  ;;  %v976_v56 = vadd.f32 %v1920_v54, %v975_v53 }
  0xd0   : > { %v944_v19 = vpop.f32.mrf.mxu1 }
  0xd1   : > { %v1048_v20 = vunpack.c.l.b16 %v979_v14  ;;  %1157 = vrot.lane.b32.xlu2 %v1054_v17, %s1990_s14  ;;  %1055 = vrot.lane.b32.xlu1 %v1054_v17, %s1991_s26  ;;  %v981_v57 = vpack.c.bf16 %v976_v56, %v976_v56 }
  0xd3   : > { %v1049_v21 = vpack.c.b16 %v1048_v20, %v1048_v20  ;;  %v1031_v58 = vsel %vm1029_vm4, %v981_v57, 0  ;;  %v1093_v13 = vunpack.c.l.b16 %v981_v57 }
  0xd4   : > { %v911_v18 = vpop.f32.mrf.mxu0  ;;  %1040 = vmatpush.bf16.msrb.mxu0 %v1031_v58 }
  0xd5   : > { %1811 = vmatmul.msk.bf16.vlgmr.msra.gmra.mxu3 %vm991_vm2, %v979_v14  ;;  %v2275_v15 = vpack.c.b16 %v1093_v13, %v1093_v13 }
  0xd6   : > { %v977_v55 = vpop.f32.mrf.mxu2 }
  0xd8   : > { %1149 = vmatpush.bf16.msra.mxu0 %v1140_v62 }
  0xd9   : > { %1155 = vrot.lane.b32.xlu2 %v1049_v21, %s1990_s14  ;;  %1050 = vrot.lane.b32.xlu1 %v1049_v21, %s1991_s26 }
  0xe1   : > { %1236 = vrot.lane.b32.xlu1 %v1049_v21, %s1992_s19 }
 0x12b   : > { %v1158_v23 = vpop.permute.xlu2 %1157 }
 0x12c   : > { %v1163_v27 = vsel %vm991_vm2, %v1158_v23, 0 }
 0x133   : > { %v1156_v34 = vpop.permute.xlu2 %1155 }
 0x143   : > { %v1056_v25 = vpop.permute.xlu1 %1055 }
 0x144   : > { %v1061_v26 = vsel %vm991_vm2, %v1056_v25, 0 }
 0x145   : > { %1070 = vmatpush.bf16.xpose.msrb.mxu1 %v1061_v26 }
 0x14b   : > { %v1051_v28 = vpop.permute.xlu1 %1050 }
 0x14c   : > { %1813 = vmatmul.msk.bf16.vlgmr.msrb.gmra.mxu1 %vm991_vm2, %v1051_v28 }
 0x14d   : > { %1172 = vmatpush.bf16.xpose.msra.mxu1 %v1163_v27 }
 0x153   : > { %v1237_v0 = vpop.permute.xlu1 %1236 }
 0x158   : > { %v1007_v32 = vpop.f32.mrf.mxu3 }
 0x159   : > { %v1011_v33 = vmul.f32 0.35355338, %v1007_v32 }
 0x15b   : > { %v1012_v35 = vsel %vm990_vm3, -1e+30, %v1011_v33 }
 0x15c   : > { %1818 = vmatmul.msk.bf16.vlgmr.msra.gmra.mxu1 %vm991_vm2, %v1156_v34  ;;  %v1013_v36 = vsel %vm991_vm2, %v1012_v35, -inf  ;;  %v983_v34 = vld [vmem:[%s2158_s16 + $0x4] sm:$0xf] }
 0x15d   : > { %1014 = vmax.xlane.f32.xlu0 %v1013_v36  ;;  %v984_v36 = vld [vmem:[%s2158_s16 + $0x8] sm:$0xf] }
 0x160   : > { %v1009_v37 = vpop.f32.mrf.mxu3 }
 0x161   : > { %v1220_v37 = vsel %vm1029_vm4, %v984_v36, 0 }
 0x1c9   : > { %v1072_v38 = vpop.f32.mrf.mxu1 }
 0x1ca   : > { %v1076_v39 = vmul.f32 0.35355338, %v1072_v38 }
 0x1cc   : > { %v1077_v40 = vsel %vm990_vm3, -1e+30, %v1076_v39 }
 0x1cd   : > { %v1078_v41 = vsel %vm991_vm2, %v1077_v40, -inf }
 0x1ce   : > { %1079 = vmax.xlane.f32.xlu2 %v1078_v41 }
 0x1d0   : > { %v1015_v42 = vpop.xlane.xlu0 %1014 }
 0x1d1   : > { %v1016_v43 = vsub.f32 %v1012_v35, %v1015_v42  ;;  %v1074_v44 = vpop.f32.mrf.mxu1  ;;  %v1121_v35 = vsel %vm1029_vm4, %v983_v34, 0 }
 0x1d2   : > { %1130 = vmatpush.bf16.msrb.mxu3 %v1121_v35 }
 0x1d3   : > { %v1017_v45 = vmul.f32 1.442695, %v1016_v43 }
 0x1d5   : > { %1928 = vpow2.f32 %v1017_v45 }
 0x1d6   : > { %1229 = vmatpush.bf16.msra.mxu3 %v1220_v37 }
 0x1d9   : > { %v1174_v46 = vpop.f32.mrf.mxu1 }
 0x1da   : > { %v1178_v47 = vmul.f32 0.35355338, %v1174_v46 }
 0x1db   : > { %v1929_v48 = vpop.eup %1928 }
 0x1dc   : > { %v1019_v49 = vsel %vm991_vm2, %v1929_v48, 0.0  ;;  %v1179_v50 = vsel %vm990_vm3, -1e+30, %v1178_v47 }
 0x1dd   : > { %1020 = vadd.xlane.f32.xlu0 %v1019_v49  ;;  %v1180_v51 = vsel %vm991_vm2, %v1179_v50, -inf }
 0x1de   : > { %1181 = vmax.xlane.f32.xlu1 %v1180_v51 }
 0x1e1   : > { %v1176_v52 = vpop.f32.mrf.mxu1 }
 0x1f1   : > { %1238 = vrot.lane.b32.xlu0 %v1054_v17, %s1992_s19 }
 0x241   : > { %v1080_v59 = vpop.xlane.xlu2 %1079 }
 0x242   : > { %v1081_v60 = vsub.f32 %v1077_v40, %v1080_v59 }
 0x244   : > { %v1082_v63 = vmul.f32 1.442695, %v1081_v60 }
 0x246   : > { %1930 = vpow2.f32 %v1082_v63 }
 0x24c   : > { %v1931_v1 = vpop.eup %1930 }
 0x24d   : > { %v1084_v2 = vsel %vm991_vm2, %v1931_v1, 0.0 }
 0x24e   : > { %1085 = vadd.xlane.f32.xlu2 %v1084_v2  ;;  %v985_v2 = vld [vmem:[%s2158_s16 + $0xc] sm:$0xf] }
 0x250   : > { %v1021_v3 = vpop.xlane.xlu0 %1020 }
 0x251   : > { %1932 = vrcp.f32 %v1021_v3  ;;  %v1182_v4 = vpop.xlane.xlu1 %1181  ;;  %v1301_v3 = vsel %vm1029_vm4, %v985_v2, 0 }
 0x252   : > { %v1183_v6 = vsub.f32 %v1179_v50, %v1182_v4 }
 0x254   : > { %v1184_v7 = vmul.f32 1.442695, %v1183_v6 }
 0x256   : > { %1934 = vpow2.f32 %v1184_v7 }
 0x257   : > { %v1933_v8 = vpop.eup %1932 }
 0x258   : > { %v1023_v9 = vmul.f32 %v1933_v8, %v1929_v48  ;;  %v1921_v8 = vld [vmem:[%s2450_s21] ss:$0 sm:$0xff] }
 0x25a   : > { %1024 = vst.msk [vmem:[%s2207_s25] sm:$0xff] %vm991_vm2, %v1023_v9  ;;  %v1025_v10 = vpack.c.bf16 %v1023_v9, %v1023_v9 }
 0x25c   : > { %v1935_v11 = vpop.eup %1934  ;;  %1812 = vmatmul.msk.bf16.vlgmr.msrb.gmra.mxu0 %vm991_vm2, %v1025_v10 }
 0x25d   : > { %v1186_v12 = vsel %vm991_vm2, %v1935_v11, 0.0 }
 0x25e   : > { %1187 = vadd.xlane.f32.xlu1 %v1186_v12 }
 0x263   : > { %v1239_v14 = vpop.permute.xlu0 %1238 }
 0x264   : > { %v1244_v16 = vsel %vm991_vm2, %v1239_v14, 0 }
 0x265   : > { %1253 = vmatpush.bf16.xpose.msrb.mxu0 %v1244_v16 }
 0x266   : > { %1095 = vrot.lane.b32.xlu2 %v2275_v15, %s1991_s26 }
 0x277   : > { %1194 = vrot.lane.b32.xlu1 %v2275_v15, %s1990_s14 }
 0x2c1   : > { %v1086_v17 = vpop.xlane.xlu2 %1085 }
 0x2c2   : > { %1936 = vrcp.f32 %v1086_v17 }
 0x2c8   : > { %v1937_v18 = vpop.eup %1936 }
 0x2c9   : > { %v1088_v19 = vmul.f32 %v1937_v18, %v1931_v1  ;;  %v1096_v20 = vpop.permute.xlu2 %1095 }
 0x2ca   : > { %v1101_v21 = vsel %vm1029_vm4, %v1096_v20, 0 }
 0x2cb   : > { %1814 = vst.msk [vmem:[%s2207_s25 + $0x8] sm:$0xff] %vm991_vm2, %v1088_v19  ;;  %1110 = vmatpush.bf16.msrb.mxu2 %v1101_v21  ;;  %v1091_v22 = vpack.c.bf16 %v1088_v19, %v1088_v19 }
 0x2ce   : > { %1815 = vmatmul.msk.bf16.vlgmr.msrb.gmra.mxu2 %vm991_vm2, %v1091_v22 }
 0x2d1   : > { %v1188_v23 = vpop.xlane.xlu1 %1187 }
 0x2d2   : > { %1938 = vrcp.f32 %v1188_v23 }
 0x2d8   : > { %v1939_v24 = vpop.eup %1938 }
 0x2d9   : > { %v1190_v25 = vmul.f32 %v1939_v24, %v1935_v11  ;;  %v1042_v26 = vpop.f32.mrf.mxu0 }
 0x2da   : > { %v1046_v27 = vpack.c.bf16 %v1042_v26, %v1042_v26  ;;  %v1869_v26 = vld [vmem:[%s2175_s0 + $0x8] sm:$0xff] }
 0x2db   : > { %1819 = vst.msk [vmem:[%s2207_s25 + $0x10] sm:$0xff] %vm991_vm2, %v1190_v25  ;;  %v1193_v33 = vpack.c.bf16 %v1190_v25, %v1190_v25 }
 0x2dc   : > { %1817 = vmatmul.msk.bf16.vlgmr.msra.gmra.mxu0 %vm991_vm2, %v1046_v27  ;;  %v1868_v27 = vld [vmem:[%s2175_s0] sm:$0xff] }
 0x2e1   : > { %v1044_v28 = vpop.f32.mrf.mxu0 }
 0x2e2   : > { %v1873_v28 = vld [vmem:[%s2189_s9 + $0x18] sm:$0xff] }
 0x2e3   : > { %1445 = vmatpush.bf16.msra.mxu0 %v1873_v28 }
 0x2e9   : > { %v1195_v29 = vpop.permute.xlu1 %1194 }
 0x2ea   : > { %v1200_v32 = vsel %vm1029_vm4, %v1195_v29, 0 }
 0x2eb   : > { %1209 = vmatpush.bf16.msra.mxu2 %v1200_v32 }
 0x2ec   : > { %1822 = vmatmul.msk.bf16.vlgmr.msrb.gmra.mxu0 %vm991_vm2, %v1237_v0 }
 0x2ee   : > { %1820 = vmatmul.msk.bf16.vlgmr.msra.gmra.mxu2 %vm991_vm2, %v1193_v33  ;;  %v1872_v33 = vld [vmem:[%s2189_s9 + $0x10] sm:$0xff] }
 0x2ef   : > { %1310 = vmatpush.bf16.msrb.mxu2 %v1301_v3  ;;  %1446 = vmatpush.bf16.msra.mxu0 %v1872_v33 }
 0x351   : > { %v1112_v38 = vpop.f32.mrf.mxu2 }
 0x352   : > { %v1116_v39 = vpack.c.bf16 %v1112_v38, %v1112_v38 }
 0x354   : > { %1816 = vmatmul.msk.bf16.vlgmr.msrb.gmra.mxu3 %vm991_vm2, %v1116_v39 }
 0x355   : > { %1392 = vmatpush.bf16.msrb.mxu3 %v1869_v26 }
 0x359   : > { %v1114_v40 = vpop.f32.mrf.mxu2  ;;  %v1151_v41 = vpop.f32.mrf.mxu0  ;;  %1393 = vmatpush.bf16.msrb.mxu3 %v1868_v27 }
 0x361   : > { %v1153_v42 = vpop.f32.mrf.mxu0 }
 0x369   : > { %v1255_v43 = vpop.f32.mrf.mxu0 }
 0x36a   : > { %v1259_v44 = vmul.f32 0.35355338, %v1255_v43  ;;  %v1923_v43 = vld [vmem:[%s2454_s27] ss:$0 sm:$0xff] }
 0x36c   : > { %v1260_v45 = vsel %vm990_vm3, -1e+30, %v1259_v44 }
 0x36d   : > { %v1261_v46 = vsel %vm991_vm2, %v1260_v45, -inf }
 0x36e   : > { %1262 = vmax.xlane.f32.xlu0 %v1261_v46 }
 0x371   : > { %v1211_v47 = vpop.f32.mrf.mxu2  ;;  %v1257_v48 = vpop.f32.mrf.mxu0 }
 0x372   : > { %v1215_v49 = vpack.c.bf16 %v1211_v47, %v1211_v47  ;;  %v1871_v48 = vld [vmem:[%s2189_s9 + $0x8] sm:$0xff] }
 0x373   : > { %1447 = vmatpush.bf16.msra.mxu0 %v1871_v48 }
 0x374   : > { %1821 = vmatmul.msk.bf16.vlgmr.msra.gmra.mxu3 %vm991_vm2, %v1215_v49  ;;  %v1870_v49 = vld [vmem:[%s2189_s9] sm:$0xff] }
 0x377   : > { %1448 = vmatpush.bf16.msra.mxu0 %v1870_v49 }
 0x379   : > { %v1213_v50 = vpop.f32.mrf.mxu2 }
 0x37a   : > { %v1924_v50 = vld [vmem:[%s2456_s28] ss:$0 sm:$0xff] }
 0x3d7   : > { %v1132_v51 = vpop.f32.mrf.mxu3 }
 0x3d8   : > { %v1152_v31 = vadd.f32 %v1151_v41, %v1132_v51 }
 0x3df   : > { %v1134_v52 = vpop.f32.mrf.mxu3 }
 0x3e1   : > { %v1263_v53 = vpop.xlane.xlu0 %1262 }
 0x3e2   : > { %v1264_v54 = vsub.f32 %v1260_v45, %v1263_v53 }
 0x3e4   : > { %v1265_v55 = vmul.f32 1.442695, %v1264_v54 }
 0x3e6   : > { %1940 = vpow2.f32 %v1265_v55 }
 0x3ec   : > { %v1941_v56 = vpop.eup %1940 }
 0x3ed   : > { %v1267_v30 = vsel %vm991_vm2, %v1941_v56, 0.0 }
 0x3ee   : > { %1268 = vadd.xlane.f32.xlu0 %v1267_v30 }
 0x3f7   : > { %v1231_v57 = vpop.f32.mrf.mxu3 }
 0x3f8   : > { %v1235_v58 = vadd.f32 %v1231_v57, %v1152_v31 }
 0x3ff   : > { %v1233_v59 = vpop.f32.mrf.mxu3 }
 0x402   : > { %1275 = vrot.lane.b32.xlu0 %v2275_v15, %s1992_s19  ;;  %v1993_v15 = vmov 32.0  }
 0x461   : > { %v1269_v60 = vpop.xlane.xlu0 %1268 }
 0x462   : > { %1942 = vrcp.f32 %v1269_v60 }
 0x463   : > { %1944 = vrcp.f32 %v1993_v15 }
 0x468   : > { %v1943_v61 = vpop.eup %1942 }
 0x469   : > { %v1271_v62 = vmul.f32 %v1943_v61, %v1941_v56  ;;  %v1945_v16 = vpop.eup %1944  ;;  %v1925_v56 = vld [vmem:[%s846_s8] ss:$0 sm:$0xff] }
 0x46a   : > { %v1329_v17 = vmul.f32 32.0, %v1945_v16  ;;  %vm1333_vm5 = vweird.f32 %v1945_v16 }
 0x46b   : > { %1823 = vst.msk [vmem:[%s2207_s25 + $0x18] sm:$0xff] %vm991_vm2, %v1271_v62  ;;  %v1274_v1 = vpack.c.bf16 %v1271_v62, %v1271_v62  ;;  %s2452_s25 = scalar_lea.vmem %s2451_s7, %s2124_s22 }
 0x46c   : > { %v1330_v18 = vsub.f32 1.0, %v1329_v17  ;;  %v1922_v41 = vld [vmem:[%s2452_s25] ss:$0 sm:$0xff] }
 0x46e   : > { %v1331_v19 = vmul.f32 %v1945_v16, %v1330_v18 }
 0x470   : > { %v1332_v20 = vadd.f32 %v1945_v16, %v1331_v19 }
 0x472   : > { %v1334_v21 = vsel %vm1333_vm5, %v1945_v16, %v1332_v20 }
 0x474   : > { %v1276_v63 = vpop.permute.xlu0 %1275 }
 0x475   : > { %v1281_v0 = vsel %vm1029_vm4, %v1276_v63, 0 }
 0x476   : > { %1290 = vmatpush.bf16.msrb.mxu1 %v1281_v0 }
 0x479   : > { %1824 = vmatmul.msk.bf16.vlgmr.msrb.gmra.mxu1 %vm991_vm2, %v1274_v1 }
 0x4f6   : > { %v1292_v4 = vpop.f32.mrf.mxu1 }
 0x4f7   : > { %v1296_v6 = vpack.c.bf16 %v1292_v4, %v1292_v4 }
 0x4f9   : > { %1825 = vmatmul.msk.bf16.vlgmr.msrb.gmra.mxu2 %vm991_vm2, %v1296_v6 }
 0x4fe   : > { %v1294_v7 = vpop.f32.mrf.mxu1 }
 0x57c   : > { %v1312_v9 = vpop.f32.mrf.mxu2 }
 0x57d   : > { %v1316_v10 = vadd.f32 %v1312_v9, %v1235_v58 }
 0x57f   : > { %v1321_v11 = vadd.f32 %v1921_v8, %v1316_v10 }
 0x581   : > { %v1322_v12 = vadd.f32 %v1321_v11, %v2212_v5  ;;  %v1926_v11 = vld [vmem:[%s849_s5] ss:$0 sm:$0xff] }
 0x583   : > { %v1325_v13 = vsel %vm896_vm1, %v1322_v12, 0.0 }
 0x584   : > { %v1314_v14 = vpop.f32.mrf.mxu2  ;;  %1326 = vadd.xlane.f32.xlu2 %v1325_v13  ;;  %v1927_v13 = vld [vmem:[%s852_s10] ss:$0 sm:$0xff] }
 0x5f7   : > { %v1327_v22 = vpop.xlane.xlu2 %1326 }
 0x5f8   : > { %v1335_v23 = vmul.f32 %v1334_v21, %v1327_v22 }
 0x5fa   : > { %v1336_v5 = vsub.f32 %v1322_v12, %v1335_v23 }
 0x5fc   : > { %v1337_v24 = vmul.f32 %v1336_v5, %v1336_v5 }
 0x5fe   : > { %v1338_v25 = vsel %vm896_vm1, %v1337_v24, 0.0 }
 0x5ff   : > { %1339 = vadd.xlane.f32.xlu1 %v1338_v25 }
 0x672   : > { %v1340_v29 = vpop.xlane.xlu1 %1339 }
 0x673   : > { %v1341_v32 = vmul.f32 %v1340_v29, %v1334_v21 }
 0x675   : > { %v1342_v34 = vadd.f32 1e-05, %v1341_v32 }
 0x677   : > { %1946 = vrsqrt.f32 %v1342_v34  ;;  %vm1349_vm7 = vweird.f32 %v1342_v34 }
 0x67d   : > { %v1947_v35 = vpop.eup %1946 }
 0x67e   : > { %v1344_v36 = vmul.f32 %v1947_v35, %v1342_v34  ;;  %vm1350_vm6 = vweird.f32 %v1947_v35 }
 0x67f   : > { %vm1351_vm8 = vmor %vm1349_vm7, %vm1350_vm6 }
 0x680   : > { %v1345_v37 = vmul.f32 %v1947_v35, %v1344_v36 }
 0x682   : > { %v1346_v38 = vmul.f32 0.5, %v1345_v37 }
 0x684   : > { %v1347_v39 = vsub.f32 1.5, %v1346_v38 }
 0x686   : > { %v1348_v40 = vmul.f32 %v1947_v35, %v1347_v39 }
 0x688   : > { %v1352_v42 = vsel %vm1351_vm8, %v1947_v35, %v1348_v40 }
 0x689   : > { %v1353_v44 = vmul.f32 %v1352_v42, %v1336_v5 }
 0x68b   : > { %v1357_v45 = vmul.f32 %v1922_v41, %v1353_v44 }
 0x68d   : > { %v1361_v46 = vadd.f32 %v1923_v43, %v1357_v45 }
 0x68f   : > { %v1362_v47 = vpack.c.bf16 %v1361_v46, %v1361_v46 }
 0x691   : > { %1834 = vmatmul.msk.bf16.vlgmr.msrb.gmra.mxu3 %vm896_vm1, %v1362_v47 }
 0x714   : > { %v1395_v51 = vpop.f32.mrf.mxu3 }
 0x715   : > { %v1396_v52 = vadd.f32 %v1924_v50, %v1395_v51 }
 0x717   : > { %v1399_v53 = vmax.f32 %v1396_v52, 0.0 }
 0x719   : > { %v1400_v54 = vpack.c.bf16 %v1399_v53, %v1399_v53 }
 0x71b   : > { %1851 = vmatmul.msk.bf16.vlgmr.msra.gmra.mxu0 %vm1437_vm9, %v1400_v54 }
 0x71c   : > { %v1397_v55 = vpop.f32.mrf.mxu3 }
 0x798   : > { %v1450_v30 = vpop.f32.mrf.mxu0 }
 0x799   : > { %v1451_v31 = vadd.f32 %v1925_v56, %v1450_v30 }
 0x79b   : > { %v1454_v57 = vadd.f32 %v1451_v31, %v1361_v46 }
 0x79d   : > { %v1457_v58 = vsel %vm896_vm1, %v1454_v57, 0.0 }
 0x79e   : > { %1458 = vadd.xlane.f32.xlu0 %v1457_v58 }
 0x7a0   : > { %v1452_v59 = vpop.f32.mrf.mxu0 }
 0x811   : > { %v1459_v60 = vpop.xlane.xlu0 %1458 }
 0x812   : > { %v1460_v61 = vmul.f32 %v1459_v60, %v1334_v21 }
 0x814   : > { %v1461_v62 = vsub.f32 %v1454_v57, %v1460_v61 }
 0x816   : > { %v1462_v63 = vmul.f32 %v1461_v62, %v1461_v62 }
 0x818   : > { %v1463_v0 = vsel %vm896_vm1, %v1462_v63, 0.0 }
 0x819   : > { %1464 = vadd.xlane.f32.xlu2 %v1463_v0 }
 0x88c   : > { %v1465_v1 = vpop.xlane.xlu2 %1464 }
 0x88d   : > { %v1466_v2 = vmul.f32 %v1465_v1, %v1334_v21 }
 0x88f   : > { %v1467_v3 = vadd.f32 1e-05, %v1466_v2 }
 0x891   : > { %1948 = vrsqrt.f32 %v1467_v3  ;;  %vm1474_vm11 = vweird.f32 %v1467_v3 }
 0x897   : > { %v1949_v4 = vpop.eup %1948 }
 0x898   : > { %v1469_v6 = vmul.f32 %v1949_v4, %v1467_v3  ;;  %vm1475_vm10 = vweird.f32 %v1949_v4 }
 0x899   : > { %vm1476_vm12 = vmor %vm1474_vm11, %vm1475_vm10 }
 0x89a   : > { %v1470_v7 = vmul.f32 %v1949_v4, %v1469_v6 }
 0x89c   : > { %v1471_v8 = vmul.f32 0.5, %v1470_v7 }
 0x89e   : > { %v1472_v9 = vsub.f32 1.5, %v1471_v8 }
 0x8a0   : > { %v1473_v10 = vmul.f32 %v1949_v4, %v1472_v9 }
 0x8a2   : > { %v1477_v12 = vsel %vm1476_vm12, %v1949_v4, %v1473_v10 }
 0x8a3   : > { %v1478_v14 = vmul.f32 %v1477_v12, %v1461_v62 }
 0x8a5   : > { %v1482_v15 = vmul.f32 %v1926_v11, %v1478_v14  ;;  %1491 = sbr.rel (%p1852_p9) target bundleno = 2219 (0x8ab), region = 96 }
 0x8a7   : > { %v1486_v16 = vadd.f32 %v1927_v13, %v1482_v15 }
 0x8a9   : > { %1487 = vst.msk [vmem:[#allocation2] sm:$0xff] %vm896_vm1, %v1486_v16 }
 0x8aa   : > { %1492 = vst.msk [vmem:[%s2202_s12] sm:$0xff] %vm896_vm1, %v1486_v16 }
 0x8ab PF: > { %s2461_s5 = sld [smem:[#allocation6_spill]] }
 0x8ac   : > { %s2462_s27 = sld [smem:[#allocation4_spill]] }
 0x8ad   : > { %s2463_s28 = sld [smem:[#allocation5_spill]] }
 0x8ae   : > { %s2464_s29 = sld [smem:[#allocation7_spill]] }
 0x8af   : > { %s2465_s30 = sld [smem:[#allocation8_spill]] }
 0x8b1   : > { %s29_s0 = sadd.s32 1, %s2461_s5  }
 0x8b2   : > { %p26_p10 = scmp.ge.s32.totalorder %s29_s0, 6  }
 0x8b4   :  { %28 = sbr.rel (!%p26_p10) target bundleno = 18 (0x12), region = 189 }

</bundles_post_ra>
